<compile_context>
chip_gen: v5e
topology: v5e:2x2
jax: 0.10.0
libtpu: 0.0.40
codegen_flags: <defaults>
</compile_context>

<pallas_src>
import math
import functools

import jax
import jax.numpy as jnp
from jax.experimental import pallas as pl
from jax.experimental.pallas import tpu as pltpu

_LANE = 128


def _round_up(x, m):
    return ((x + m - 1) // m) * m


# --------------------------------------------------------------------------
# One-time parameter preparation (amortized across all timesteps / calls).
# --------------------------------------------------------------------------
def prepare_lstm_params(weight_ih, weight_hh, bias_ih=None, bias_hh=None,
                        dtype=None):
    """weight_ih: (4H, I), weight_hh: (4H, H), biases: (4H,) or None.

    Returns:
      w_packed: (Ip + Hp, 4*Hp)  [W_ih^T ; W_hh^T], gate-column padded so each
                                 gate block starts on a 128-lane boundary; the
                                 two matmuls fuse into two 128-aligned row
                                 slices of one VMEM-resident weight.
      b_packed: (1, 4*Hp) f32    combined, gate-padded bias
      dims:     (I, H, Ip, Hp)   static sizes for the wrapper
    """
    weight_ih = jnp.asarray(weight_ih)
    weight_hh = jnp.asarray(weight_hh)
    four_h, I = weight_ih.shape
    H = four_h // 4
    Ip = _round_up(I, _LANE)
    Hp = _round_up(H, _LANE)
    if dtype is None:
        dtype = weight_ih.dtype

    if bias_ih is None:
        b = jnp.zeros((4 * H,), dtype=jnp.float32)
    else:
        b = jnp.asarray(bias_ih, jnp.float32) + jnp.asarray(bias_hh, jnp.float32)

    w_ih_t = weight_ih.T.astype(dtype)   # (I, 4H)
    w_hh_t = weight_hh.T.astype(dtype)   # (H, 4H)

    w_packed = jnp.zeros((Ip + Hp, 4 * Hp), dtype=dtype)
    b_packed = jnp.zeros((1, 4 * Hp), dtype=jnp.float32)
    for g in range(4):
        w_packed = w_packed.at[:I, g * Hp:g * Hp + H].set(
            w_ih_t[:, g * H:(g + 1) * H])
        w_packed = w_packed.at[Ip:Ip + H, g * Hp:g * Hp + H].set(
            w_hh_t[:, g * H:(g + 1) * H])
        b_packed = b_packed.at[0, g * Hp:g * Hp + H].set(b[g * H:(g + 1) * H])
    return w_packed, b_packed, (I, H, Ip, Hp)


# --------------------------------------------------------------------------
# Kernel: one timestep per grid step, grid = (batch_tiles, T).
# --------------------------------------------------------------------------
def lstm_seq_kernel(x_ref, h0_ref, c0_ref, w_ref, b_ref,
                    h_out_ref, c_out_ref, h_sc, c_sc, *, i_pad):
    """x_ref: (1, TB, Ip) current timestep input tile
    h0_ref: (TB, Hp), c0_ref: (TB, Hp) f32  initial state (read at t == 0)
    w_ref: (Ip+Hp, 4*Hp) packed weight (VMEM-resident), b_ref: (1, 4*Hp) f32
    h_out_ref: (TB, Hp), c_out_ref: (TB, Hp) f32  written once at t == T-1
    h_sc / c_sc: (TB, Hp) recurrent carry in VMEM scratch (c carried in f32)."""
    t = pl.program_id(1)
    Hp = h_out_ref.shape[-1]

    @pl.when(t == 0)
    def _():
        h_sc[...] = h0_ref[...]
        c_sc[...] = c0_ref[...]

    # Fused gate pre-activations: two accumulating MXU contractions against
    # static 128-aligned row slices of the packed weight (native dtype in,
    # f32 accumulation out).
    gates = jnp.dot(x_ref[0], w_ref[:i_pad, :],
                    preferred_element_type=jnp.float32)
    gates = gates + jnp.dot(h_sc[...], w_ref[i_pad:, :],
                            preferred_element_type=jnp.float32)
    gates = gates + b_ref[...]

    # Lane-aligned gate slices (each gate block starts on a 128-lane boundary).
    i_g = jax.nn.sigmoid(gates[:, 0 * Hp:1 * Hp])
    f_g = jax.nn.sigmoid(gates[:, 1 * Hp:2 * Hp])
    g_g = jnp.tanh(gates[:, 2 * Hp:3 * Hp])
    o_g = jax.nn.sigmoid(gates[:, 3 * Hp:4 * Hp])

    c_new = f_g * c_sc[...] + i_g * g_g
    h_new = o_g * jnp.tanh(c_new)

    c_sc[...] = c_new                       # f32 carry: no bf16 drift over T
    h_sc[...] = h_new.astype(h_sc.dtype)

    @pl.when(t == pl.num_programs(1) - 1)
    def _():
        h_out_ref[...] = h_sc[...]
        c_out_ref[...] = c_sc[...]


# --------------------------------------------------------------------------
# Wrappers.
# --------------------------------------------------------------------------
@functools.partial(jax.jit, static_argnames=("dims", "single_buffer_weights"))
def _lstm_sequence_impl(x_seq, h0, c0, w_packed, b_packed, *, dims,
                        single_buffer_weights):
    I, H, Ip, Hp = dims
    T, B, _ = x_seq.shape
    act_dtype = x_seq.dtype
    act_item = jnp.dtype(act_dtype).itemsize
    sub = max(8, 32 // act_item)            # sublane multiple: 8 f32/16 bf16/32 i8

    # dtype/padding-aware batch tiling; single tile for small B so a
    # weight-DMA-bound step is not split across the two v7x TensorCores.
    if B <= 256:
        TB = _round_up(B, sub)
        B_pad = TB
    else:
        TB = min((128, 256), key=lambda t: (_round_up(B, t), -t))
        B_pad = _round_up(B, TB)
    nb = B_pad // TB

    # Pad once per call (not per timestep).  Padded rows/cols multiply zero
    # weight rows, so they contribute nothing numerically.
    x_p = x_seq
    if B_pad != B or Ip != I:
        x_p = jnp.pad(x_seq, ((0, 0), (0, B_pad - B), (0, Ip - I)))
    h_p = h0.astype(act_dtype)
    c_p = c0.astype(jnp.float32)
    if B_pad != B or Hp != H:
        h_p = jnp.pad(h_p, ((0, B_pad - B), (0, Hp - H)))
        c_p = jnp.pad(c_p, ((0, B_pad - B), (0, Hp - H)))

    # Generation-aware VMEM budget: resident weights (1 or 2 copies), the
    # double-buffered activation tiles, carries and f32 elementwise temps,
    # clamped to the chip's physical VMEM minus headroom.
    w_item = jnp.dtype(w_packed.dtype).itemsize
    w_bufs = 1 if single_buffer_weights else 2
    need = (w_bufs * (w_packed.size * w_item + b_packed.size * 4)
            + 2 * TB * (Ip * act_item + Hp * act_item + Hp * 4)   # x, h0, c0
            + 2 * TB * (Hp * act_item + Hp * 4)                   # h_out, c_out
            + TB * Hp * (act_item + 4)                            # carries
            + TB * Hp * 4 * 12)                                   # f32 gate temps
    try:
        cap = pltpu.get_tpu_info().vmem_capacity_bytes
    except Exception:
        cap = 64 << 20                                            # safe default
    vmem_limit = max(int(1.2 * need) + (2 << 20), 16 << 20)
    vmem_limit = int(min(vmem_limit, cap - (8 << 20)))

    weight_spec_kwargs = {}
    if single_buffer_weights:
        # Constant index map -> no double buffer needed: one VMEM copy.
        weight_spec_kwargs["pipeline_mode"] = pl.Buffered(1)

    grid = (nb, T)
    h_out, c_out = pl.pallas_call(
        functools.partial(lstm_seq_kernel, i_pad=Ip),
        out_shape=(jax.ShapeDtypeStruct((B_pad, Hp), act_dtype),
                   jax.ShapeDtypeStruct((B_pad, Hp), jnp.float32)),
        grid=grid,
        in_specs=[
            # x: one (TB, Ip) timestep tile per grid step (streams over b, t).
            pl.BlockSpec((1, TB, Ip), lambda b, t: (t, b, 0)),
            # h0 / c0: consumed only at t == 0; block depends on b only.
            pl.BlockSpec((TB, Hp), lambda b, t: (b, 0)),
            pl.BlockSpec((TB, Hp), lambda b, t: (b, 0)),
            # Packed weight / bias: constant index map -> fetched once and
            # VMEM-resident for the whole call; single-buffered.
            pl.BlockSpec((Ip + Hp, 4 * Hp), lambda b, t: (0, 0),
                         **weight_spec_kwargs),
            pl.BlockSpec((1, 4 * Hp), lambda b, t: (0, 0),
                         **weight_spec_kwargs),
        ],
        out_specs=(
            # Constant over t -> written back once per batch tile.
            pl.BlockSpec((TB, Hp), lambda b, t: (b, 0)),
            pl.BlockSpec((TB, Hp), lambda b, t: (b, 0)),
        ),
        scratch_shapes=[
            pltpu.VMEM((TB, Hp), act_dtype),      # h carry
            pltpu.VMEM((TB, Hp), jnp.float32),    # c carry (f32)
        ],
        compiler_params=pltpu.CompilerParams(
            dimension_semantics=("parallel", "arbitrary"),
            vmem_limit_bytes=vmem_limit,
        ),
    )(x_p, h_p, c_p, w_packed, b_packed)

    h_fin = h_out[:B, :H]
    c_fin = c_out[:B, :H].astype(c0.dtype)
    return h_fin, c_fin


def lstm_sequence(x_seq, hx, w_packed, b_packed, dims):
    """Run T chained LSTMCell steps inside ONE pallas_call (weights stay
    VMEM-resident across all timesteps).
    x_seq: (T, B, input_size); hx = (h0, c0) each (B, hidden_size).
    Returns the final (h_T, c_T), each (B, hidden_size)."""
    h0, c0 = hx
    try:
        return _lstm_sequence_impl(x_seq, h0, c0, w_packed, b_packed,
                                   dims=dims, single_buffer_weights=True)
    except Exception:
        # Fallback if this JAX build rejects pipeline_mode=pl.Buffered(1).
        return _lstm_sequence_impl(x_seq, h0, c0, w_packed, b_packed,
                                   dims=dims, single_buffer_weights=False)


def lstm_cell(x, hx, w_packed, b_packed, dims):
    """Single-step LSTMCell forward (the PyTorch module semantics).
    x: (B, input_size); hx = (h0, c0) each (B, hidden_size)."""
    return lstm_sequence(x[None], hx, w_packed, b_packed, dims)


# --------------------------------------------------------------------------
# Pure-JAX reference for correctness checking.
# --------------------------------------------------------------------------
def lstm_cell_ref(x, hx, weight_ih, weight_hh, bias_ih, bias_hh):
    h0, c0 = hx
    H = h0.shape[1]
    gates = x @ weight_ih.T + bias_ih + h0 @ weight_hh.T + bias_hh
    i_g = jax.nn.sigmoid(gates[:, 0 * H:1 * H])
    f_g = jax.nn.sigmoid(gates[:, 1 * H:2 * H])
    g_g = jnp.tanh(gates[:, 2 * H:3 * H])
    o_g = jax.nn.sigmoid(gates[:, 3 * H:4 * H])
    c_new = f_g * c0 + i_g * g_g
    h_new = o_g * jnp.tanh(c_new)
    return h_new, c_new


if __name__ == "__main__":
    B, I, H, T = 4, 16, 32, 6

    key = jax.random.PRNGKey(0)
    kx, kh, kc, k1, k2, k3, k4 = jax.random.split(key, 7)

    # Deterministic parameter init matching reset_parameters():
    # uniform(-stdv, stdv) with stdv = 1/sqrt(hidden_size).
    stdv = 1.0 / math.sqrt(H)
    weight_ih = jax.random.uniform(k1, (4 * H, I), jnp.float32, -stdv, stdv)
    weight_hh = jax.random.uniform(k2, (4 * H, H), jnp.float32, -stdv, stdv)
    bias_ih = jax.random.uniform(k3, (4 * H,), jnp.float32, -stdv, stdv)
    bias_hh = jax.random.uniform(k4, (4 * H,), jnp.float32, -stdv, stdv)

    x_seq = jax.random.normal(kx, (T, B, I), jnp.float32)
    h0 = jax.random.normal(kh, (B, H), jnp.float32)
    c0 = jax.random.normal(kc, (B, H), jnp.float32)

    # One-time parameter preparation (amortized across timesteps).
    w_packed, b_packed, dims = prepare_lstm_params(
        weight_ih, weight_hh, bias_ih, bias_hh)

    # ---- single step (the module's forward) ------------------------------
    h1, c1 = lstm_cell(x_seq[0], (h0, c0), w_packed, b_packed, dims)
    jax.block_until_ready((h1, c1))
    h_ref, c_ref = lstm_cell_ref(x_seq[0], (h0, c0),
                                 weight_ih, weight_hh, bias_ih, bias_hh)
    assert h1.shape == (B, H) and c1.shape == (B, H)
    assert jnp.allclose(h1, h_ref, atol=5e-5, rtol=5e-5)
    assert jnp.allclose(c1, c_ref, atol=5e-5, rtol=5e-5)

    # ---- whole sequence in a single pallas_call (recurrent use case) -----
    hT, cT = lstm_sequence(x_seq, (h0, c0), w_packed, b_packed, dims)
    jax.block_until_ready((hT, cT))
    hr, cr = h0, c0
    for t in range(T):
        hr, cr = lstm_cell_ref(x_seq[t], (hr, cr),
                               weight_ih, weight_hh, bias_ih, bias_hh)
    assert hT.shape == (B, H) and cT.shape == (B, H)
    assert jnp.allclose(hT, hr, atol=2e-4, rtol=2e-4)
    assert jnp.allclose(cT, cr, atol=2e-4, rtol=2e-4)

    print("KERNEL_OK")
</pallas_src>

<mosaic_0001>
module attributes {stable_mosaic.version = 11 : i64} {
  func.func @lstm_seq_kernel(%arg0: i32, %arg1: i32, %arg2: memref<1x8x128xf32, #tpu.memory_space<vmem>>, %arg3: memref<8x128xf32, #tpu.memory_space<vmem>>, %arg4: memref<8x128xf32, #tpu.memory_space<vmem>>, %arg5: memref<256x512xf32, #tpu.memory_space<vmem>>, %arg6: memref<1x512xf32, #tpu.memory_space<vmem>>, %arg7: memref<8x128xf32, #tpu.memory_space<vmem>>, %arg8: memref<8x128xf32, #tpu.memory_space<vmem>>, %arg9: memref<8x128xf32, #tpu.memory_space<vmem>>, %arg10: memref<8x128xf32, #tpu.memory_space<vmem>>) attributes {dimension_semantics = [#tpu.dimension_semantics<parallel>, #tpu.dimension_semantics<arbitrary>], iteration_bounds = array<i64: 1, 1>, scalar_prefetch = 0 : i64, scratch_operands = 2 : i64, tpu.core_type = #tpu.core_type<tc>, window_params = [{transform_indices = @transform_0, window_bounds = array<i64: 1, 8, 128>}, {transform_indices = @transform_1, window_bounds = array<i64: 8, 128>}, {transform_indices = @transform_2, window_bounds = array<i64: 8, 128>}, {pipeline_mode = #tpu.pipeline_mode<synchronous>, transform_indices = @transform_3, window_bounds = array<i64: 256, 512>}, {pipeline_mode = #tpu.pipeline_mode<synchronous>, transform_indices = @transform_4, window_bounds = array<i64: 1, 512>}, {transform_indices = @transform_5, window_bounds = array<i64: 8, 128>}, {transform_indices = @transform_6, window_bounds = array<i64: 8, 128>}]} {
    %c0_i32 = arith.constant 0 : i32
    %0 = arith.cmpi eq, %arg1, %c0_i32 : i32
    %1 = arith.extui %0 : i1 to i32
    %c0_i32_0 = arith.constant 0 : i32
    %2 = arith.cmpi ne, %1, %c0_i32_0 : i32
    scf.if %2 {
      %c0_22 = arith.constant 0 : index
      %c0_23 = arith.constant 0 : index
      %45 = vector.load %arg3[%c0_22, %c0_23] : memref<8x128xf32, #tpu.memory_space<vmem>>, vector<8x128xf32>
      %c0_24 = arith.constant 0 : index
      %c0_25 = arith.constant 0 : index
      %46 = vector.load %arg9[%c0_24, %c0_25] : memref<8x128xf32, #tpu.memory_space<vmem>>, vector<8x128xf32>
      tpu.vector_store %arg9[%c0_24, %c0_25], %45 {strides = array<i32>} : memref<8x128xf32, #tpu.memory_space<vmem>>, vector<8x128xf32>,
      %c0_26 = arith.constant 0 : index
      %c0_27 = arith.constant 0 : index
      %47 = vector.load %arg4[%c0_26, %c0_27] : memref<8x128xf32, #tpu.memory_space<vmem>>, vector<8x128xf32>
      %c0_28 = arith.constant 0 : index
      %c0_29 = arith.constant 0 : index
      %48 = vector.load %arg10[%c0_28, %c0_29] : memref<8x128xf32, #tpu.memory_space<vmem>>, vector<8x128xf32>
      tpu.vector_store %arg10[%c0_28, %c0_29], %47 {strides = array<i32>} : memref<8x128xf32, #tpu.memory_space<vmem>>, vector<8x128xf32>,
    } else {
    }
    %c0 = arith.constant 0 : index
    %c0_1 = arith.constant 0 : index
    %c0_2 = arith.constant 0 : index
    %3 = vector.load %arg2[%c0, %c0_1, %c0_2] : memref<1x8x128xf32, #tpu.memory_space<vmem>>, vector<1x8x128xf32>
    %4 = vector.shape_cast %3 : vector<1x8x128xf32> to vector<8x128xf32>
    %c0_3 = arith.constant 0 : index
    %c0_4 = arith.constant 0 : index
    %5 = vector.load %arg5[%c0_3, %c0_4] : memref<256x512xf32, #tpu.memory_space<vmem>>, vector<128x512xf32>
    %cst = arith.constant dense<0.000000e+00> : vector<8x512xf32>
    %6 = tpu.matmul %4, %5, %cst {dimension_numbers = #tpu.dot_dimension_numbers<[1], [0], [0], [1], [0, 0, 1, 1], [], []>} : vector<8x128xf32>, vector<128x512xf32>, vector<8x512xf32> -> vector<8x512xf32>
    %c0_5 = arith.constant 0 : index
    %c0_6 = arith.constant 0 : index
    %7 = vector.load %arg9[%c0_5, %c0_6] : memref<8x128xf32, #tpu.memory_space<vmem>>, vector<8x128xf32>
    %c128 = arith.constant 128 : index
    %c0_7 = arith.constant 0 : index
    %8 = vector.load %arg5[%c128, %c0_7] : memref<256x512xf32, #tpu.memory_space<vmem>>, vector<128x512xf32>
    %cst_8 = arith.constant dense<0.000000e+00> : vector<8x512xf32>
    %9 = tpu.matmul %7, %8, %cst_8 {dimension_numbers = #tpu.dot_dimension_numbers<[1], [0], [0], [1], [0, 0, 1, 1], [], []>} : vector<8x128xf32>, vector<128x512xf32>, vector<8x512xf32> -> vector<8x512xf32>
    %10 = arith.addf %6, %9 : vector<8x512xf32>
    %c0_9 = arith.constant 0 : index
    %c0_10 = arith.constant 0 : index
    %11 = vector.load %arg6[%c0_9, %c0_10] : memref<1x512xf32, #tpu.memory_space<vmem>>, vector<1x512xf32>
    %12 = vector.broadcast %11 : vector<1x512xf32> to vector<8x512xf32>
    %13 = arith.addf %10, %12 : vector<8x512xf32>
    %14 = vector.extract_strided_slice %13 {offsets = [0, 0], sizes = [8, 128], strides = [1, 1]} : vector<8x512xf32> to vector<8x128xf32>
    %15 = arith.negf %14 : vector<8x128xf32>
    %16 = math.exp %15 : vector<8x128xf32>
    %cst_11 = arith.constant 1.000000e+00 : f32
    %17 = vector.broadcast %cst_11 : f32 to vector<8x128xf32>
    %18 = arith.addf %17, %16 : vector<8x128xf32>
    %19 = arith.divf %17, %18 : vector<8x128xf32>
    %20 = vector.extract_strided_slice %13 {offsets = [0, 128], sizes = [8, 128], strides = [1, 1]} : vector<8x512xf32> to vector<8x128xf32>
    %21 = arith.negf %20 : vector<8x128xf32>
    %22 = math.exp %21 : vector<8x128xf32>
    %cst_12 = arith.constant 1.000000e+00 : f32
    %23 = vector.broadcast %cst_12 : f32 to vector<8x128xf32>
    %24 = arith.addf %23, %22 : vector<8x128xf32>
    %25 = arith.divf %23, %24 : vector<8x128xf32>
    %26 = vector.extract_strided_slice %13 {offsets = [0, 256], sizes = [8, 128], strides = [1, 1]} : vector<8x512xf32> to vector<8x128xf32>
    %27 = math.tanh %26 : vector<8x128xf32>
    %28 = vector.extract_strided_slice %13 {offsets = [0, 384], sizes = [8, 128], strides = [1, 1]} : vector<8x512xf32> to vector<8x128xf32>
    %29 = arith.negf %28 : vector<8x128xf32>
    %30 = math.exp %29 : vector<8x128xf32>
    %cst_13 = arith.constant 1.000000e+00 : f32
    %31 = vector.broadcast %cst_13 : f32 to vector<8x128xf32>
    %32 = arith.addf %31, %30 : vector<8x128xf32>
    %33 = arith.divf %31, %32 : vector<8x128xf32>
    %c0_14 = arith.constant 0 : index
    %c0_15 = arith.constant 0 : index
    %34 = vector.load %arg10[%c0_14, %c0_15] : memref<8x128xf32, #tpu.memory_space<vmem>>, vector<8x128xf32>
    %35 = arith.mulf %25, %34 : vector<8x128xf32>
    %36 = arith.mulf %19, %27 : vector<8x128xf32>
    %37 = arith.addf %35, %36 : vector<8x128xf32>
    %38 = math.tanh %37 : vector<8x128xf32>
    %39 = arith.mulf %33, %38 : vector<8x128xf32>
    %c0_16 = arith.constant 0 : index
    %c0_17 = arith.constant 0 : index
    %40 = vector.load %arg10[%c0_16, %c0_17] : memref<8x128xf32, #tpu.memory_space<vmem>>, vector<8x128xf32>
    tpu.vector_store %arg10[%c0_16, %c0_17], %37 {strides = array<i32>} : memref<8x128xf32, #tpu.memory_space<vmem>>, vector<8x128xf32>,
    %c0_18 = arith.constant 0 : index
    %c0_19 = arith.constant 0 : index
    %41 = vector.load %arg9[%c0_18, %c0_19] : memref<8x128xf32, #tpu.memory_space<vmem>>, vector<8x128xf32>
    tpu.vector_store %arg9[%c0_18, %c0_19], %39 {strides = array<i32>} : memref<8x128xf32, #tpu.memory_space<vmem>>, vector<8x128xf32>,
    %c0_i32_20 = arith.constant 0 : i32
    %42 = arith.cmpi eq, %arg1, %c0_i32_20 : i32
    %43 = arith.extui %42 : i1 to i32
    %c0_i32_21 = arith.constant 0 : i32
    %44 = arith.cmpi ne, %43, %c0_i32_21 : i32
    scf.if %44 {
      %c0_22 = arith.constant 0 : index
      %c0_23 = arith.constant 0 : index
      %45 = vector.load %arg9[%c0_22, %c0_23] : memref<8x128xf32, #tpu.memory_space<vmem>>, vector<8x128xf32>
      %c0_24 = arith.constant 0 : index
      %c0_25 = arith.constant 0 : index
      %46 = vector.load %arg7[%c0_24, %c0_25] : memref<8x128xf32, #tpu.memory_space<vmem>>, vector<8x128xf32>
      tpu.vector_store %arg7[%c0_24, %c0_25], %45 {strides = array<i32>} : memref<8x128xf32, #tpu.memory_space<vmem>>, vector<8x128xf32>,
      %c0_26 = arith.constant 0 : index
      %c0_27 = arith.constant 0 : index
      %47 = vector.load %arg10[%c0_26, %c0_27] : memref<8x128xf32, #tpu.memory_space<vmem>>, vector<8x128xf32>
      %c0_28 = arith.constant 0 : index
      %c0_29 = arith.constant 0 : index
      %48 = vector.load %arg8[%c0_28, %c0_29] : memref<8x128xf32, #tpu.memory_space<vmem>>, vector<8x128xf32>
      tpu.vector_store %arg8[%c0_28, %c0_29], %47 {strides = array<i32>} : memref<8x128xf32, #tpu.memory_space<vmem>>, vector<8x128xf32>,
    } else {
    }
    return
  }
  func.func @transform_0(%arg0: i32, %arg1: i32) -> (i32, i32, i32) {
    %c0_i32 = arith.constant 0 : i32
    %c0_i32_0 = arith.constant 0 : i32
    return %arg1, %arg0, %c0_i32 : i32, i32, i32
  }
  func.func @transform_1(%arg0: i32, %arg1: i32) -> (i32, i32) {
    %c0_i32 = arith.constant 0 : i32
    %c0_i32_0 = arith.constant 0 : i32
    return %arg0, %c0_i32 : i32, i32
  }
  func.func @transform_2(%arg0: i32, %arg1: i32) -> (i32, i32) {
    %c0_i32 = arith.constant 0 : i32
    %c0_i32_0 = arith.constant 0 : i32
    return %arg0, %c0_i32 : i32, i32
  }
  func.func @transform_3(%arg0: i32, %arg1: i32) -> (i32, i32) {
    %c0_i32 = arith.constant 0 : i32
    %c0_i32_0 = arith.constant 0 : i32
    %c0_i32_1 = arith.constant 0 : i32
    return %c0_i32, %c0_i32_0 : i32, i32
  }
  func.func @transform_4(%arg0: i32, %arg1: i32) -> (i32, i32) {
    %c0_i32 = arith.constant 0 : i32
    %c0_i32_0 = arith.constant 0 : i32
    %c0_i32_1 = arith.constant 0 : i32
    return %c0_i32, %c0_i32_0 : i32, i32
  }
  func.func @transform_5(%arg0: i32, %arg1: i32) -> (i32, i32) {
    %c0_i32 = arith.constant 0 : i32
    %c0_i32_0 = arith.constant 0 : i32
    return %arg0, %c0_i32 : i32, i32
  }
  func.func @transform_6(%arg0: i32, %arg1: i32) -> (i32, i32) {
    %c0_i32 = arith.constant 0 : i32
    %c0_i32_0 = arith.constant 0 : i32
    return %arg0, %c0_i32 : i32, i32
  }
}

module attributes {stable_mosaic.version = 11 : i64} {
  func.func @lstm_seq_kernel(%arg0: i32, %arg1: i32, %arg2: memref<1x8x128xf32, #tpu.memory_space<vmem>>, %arg3: memref<8x128xf32, #tpu.memory_space<vmem>>, %arg4: memref<8x128xf32, #tpu.memory_space<vmem>>, %arg5: memref<256x512xf32, #tpu.memory_space<vmem>>, %arg6: memref<1x512xf32, #tpu.memory_space<vmem>>, %arg7: memref<8x128xf32, #tpu.memory_space<vmem>>, %arg8: memref<8x128xf32, #tpu.memory_space<vmem>>, %arg9: memref<8x128xf32, #tpu.memory_space<vmem>>, %arg10: memref<8x128xf32, #tpu.memory_space<vmem>>) attributes {dimension_semantics = [#tpu.dimension_semantics<parallel>, #tpu.dimension_semantics<arbitrary>], iteration_bounds = array<i64: 1, 1>, scalar_prefetch = 0 : i64, scratch_operands = 2 : i64, tpu.core_type = #tpu.core_type<tc>, window_params = [{transform_indices = @transform_0, window_bounds = array<i64: 1, 8, 128>}, {transform_indices = @transform_1, window_bounds = array<i64: 8, 128>}, {transform_indices = @transform_2, window_bounds = array<i64: 8, 128>}, {pipeline_mode = #tpu.pipeline_mode<synchronous>, transform_indices = @transform_3, window_bounds = array<i64: 256, 512>}, {pipeline_mode = #tpu.pipeline_mode<synchronous>, transform_indices = @transform_4, window_bounds = array<i64: 1, 512>}, {transform_indices = @transform_5, window_bounds = array<i64: 8, 128>}, {transform_indices = @transform_6, window_bounds = array<i64: 8, 128>}]} {
    %c0_i32 = arith.constant 0 : i32
    %0 = arith.cmpi eq, %arg1, %c0_i32 : i32
    %1 = arith.extui %0 : i1 to i32
    %c0_i32_0 = arith.constant 0 : i32
    %2 = arith.cmpi ne, %1, %c0_i32_0 : i32
    scf.if %2 {
      %c0_22 = arith.constant 0 : index
      %c0_23 = arith.constant 0 : index
      %45 = vector.load %arg3[%c0_22, %c0_23] : memref<8x128xf32, #tpu.memory_space<vmem>>, vector<8x128xf32>
      %c0_24 = arith.constant 0 : index
      %c0_25 = arith.constant 0 : index
      %46 = vector.load %arg9[%c0_24, %c0_25] : memref<8x128xf32, #tpu.memory_space<vmem>>, vector<8x128xf32>
      tpu.vector_store %arg9[%c0_24, %c0_25], %45 {strides = array<i32>} : memref<8x128xf32, #tpu.memory_space<vmem>>, vector<8x128xf32>,
      %c0_26 = arith.constant 0 : index
      %c0_27 = arith.constant 0 : index
      %47 = vector.load %arg4[%c0_26, %c0_27] : memref<8x128xf32, #tpu.memory_space<vmem>>, vector<8x128xf32>
      %c0_28 = arith.constant 0 : index
      %c0_29 = arith.constant 0 : index
      %48 = vector.load %arg10[%c0_28, %c0_29] : memref<8x128xf32, #tpu.memory_space<vmem>>, vector<8x128xf32>
      tpu.vector_store %arg10[%c0_28, %c0_29], %47 {strides = array<i32>} : memref<8x128xf32, #tpu.memory_space<vmem>>, vector<8x128xf32>,
    } else {
    }
    %c0 = arith.constant 0 : index
    %c0_1 = arith.constant 0 : index
    %c0_2 = arith.constant 0 : index
    %3 = vector.load %arg2[%c0, %c0_1, %c0_2] : memref<1x8x128xf32, #tpu.memory_space<vmem>>, vector<1x8x128xf32>
    %4 = vector.shape_cast %3 : vector<1x8x128xf32> to vector<8x128xf32>
    %c0_3 = arith.constant 0 : index
    %c0_4 = arith.constant 0 : index
    %5 = vector.load %arg5[%c0_3, %c0_4] : memref<256x512xf32, #tpu.memory_space<vmem>>, vector<128x512xf32>
    %cst = arith.constant dense<0.000000e+00> : vector<8x512xf32>
    %6 = tpu.matmul %4, %5, %cst {dimension_numbers = #tpu.dot_dimension_numbers<[1], [0], [0], [1], [0, 0, 1, 1], [], []>} : vector<8x128xf32>, vector<128x512xf32>, vector<8x512xf32> -> vector<8x512xf32>
    %c0_5 = arith.constant 0 : index
    %c0_6 = arith.constant 0 : index
    %7 = vector.load %arg9[%c0_5, %c0_6] : memref<8x128xf32, #tpu.memory_space<vmem>>, vector<8x128xf32>
    %c128 = arith.constant 128 : index
    %c0_7 = arith.constant 0 : index
    %8 = vector.load %arg5[%c128, %c0_7] : memref<256x512xf32, #tpu.memory_space<vmem>>, vector<128x512xf32>
    %cst_8 = arith.constant dense<0.000000e+00> : vector<8x512xf32>
    %9 = tpu.matmul %7, %8, %cst_8 {dimension_numbers = #tpu.dot_dimension_numbers<[1], [0], [0], [1], [0, 0, 1, 1], [], []>} : vector<8x128xf32>, vector<128x512xf32>, vector<8x512xf32> -> vector<8x512xf32>
    %10 = arith.addf %6, %9 : vector<8x512xf32>
    %c0_9 = arith.constant 0 : index
    %c0_10 = arith.constant 0 : index
    %11 = vector.load %arg6[%c0_9, %c0_10] : memref<1x512xf32, #tpu.memory_space<vmem>>, vector<1x512xf32>
    %12 = vector.broadcast %11 : vector<1x512xf32> to vector<8x512xf32>
    %13 = arith.addf %10, %12 : vector<8x512xf32>
    %14 = vector.extract_strided_slice %13 {offsets = [0, 0], sizes = [8, 128], strides = [1, 1]} : vector<8x512xf32> to vector<8x128xf32>
    %15 = arith.negf %14 : vector<8x128xf32>
    %16 = math.exp %15 : vector<8x128xf32>
    %cst_11 = arith.constant 1.000000e+00 : f32
    %17 = vector.broadcast %cst_11 : f32 to vector<8x128xf32>
    %18 = arith.addf %17, %16 : vector<8x128xf32>
    %19 = arith.divf %17, %18 : vector<8x128xf32>
    %20 = vector.extract_strided_slice %13 {offsets = [0, 128], sizes = [8, 128], strides = [1, 1]} : vector<8x512xf32> to vector<8x128xf32>
    %21 = arith.negf %20 : vector<8x128xf32>
    %22 = math.exp %21 : vector<8x128xf32>
    %cst_12 = arith.constant 1.000000e+00 : f32
    %23 = vector.broadcast %cst_12 : f32 to vector<8x128xf32>
    %24 = arith.addf %23, %22 : vector<8x128xf32>
    %25 = arith.divf %23, %24 : vector<8x128xf32>
    %26 = vector.extract_strided_slice %13 {offsets = [0, 256], sizes = [8, 128], strides = [1, 1]} : vector<8x512xf32> to vector<8x128xf32>
    %27 = math.tanh %26 : vector<8x128xf32>
    %28 = vector.extract_strided_slice %13 {offsets = [0, 384], sizes = [8, 128], strides = [1, 1]} : vector<8x512xf32> to vector<8x128xf32>
    %29 = arith.negf %28 : vector<8x128xf32>
    %30 = math.exp %29 : vector<8x128xf32>
    %cst_13 = arith.constant 1.000000e+00 : f32
    %31 = vector.broadcast %cst_13 : f32 to vector<8x128xf32>
    %32 = arith.addf %31, %30 : vector<8x128xf32>
    %33 = arith.divf %31, %32 : vector<8x128xf32>
    %c0_14 = arith.constant 0 : index
    %c0_15 = arith.constant 0 : index
    %34 = vector.load %arg10[%c0_14, %c0_15] : memref<8x128xf32, #tpu.memory_space<vmem>>, vector<8x128xf32>
    %35 = arith.mulf %25, %34 : vector<8x128xf32>
    %36 = arith.mulf %19, %27 : vector<8x128xf32>
    %37 = arith.addf %35, %36 : vector<8x128xf32>
    %38 = math.tanh %37 : vector<8x128xf32>
    %39 = arith.mulf %33, %38 : vector<8x128xf32>
    %c0_16 = arith.constant 0 : index
    %c0_17 = arith.constant 0 : index
    %40 = vector.load %arg10[%c0_16, %c0_17] : memref<8x128xf32, #tpu.memory_space<vmem>>, vector<8x128xf32>
    tpu.vector_store %arg10[%c0_16, %c0_17], %37 {strides = array<i32>} : memref<8x128xf32, #tpu.memory_space<vmem>>, vector<8x128xf32>,
    %c0_18 = arith.constant 0 : index
    %c0_19 = arith.constant 0 : index
    %41 = vector.load %arg9[%c0_18, %c0_19] : memref<8x128xf32, #tpu.memory_space<vmem>>, vector<8x128xf32>
    tpu.vector_store %arg9[%c0_18, %c0_19], %39 {strides = array<i32>} : memref<8x128xf32, #tpu.memory_space<vmem>>, vector<8x128xf32>,
    %c0_i32_20 = arith.constant 0 : i32
    %42 = arith.cmpi eq, %arg1, %c0_i32_20 : i32
    %43 = arith.extui %42 : i1 to i32
    %c0_i32_21 = arith.constant 0 : i32
    %44 = arith.cmpi ne, %43, %c0_i32_21 : i32
    scf.if %44 {
      %c0_22 = arith.constant 0 : index
      %c0_23 = arith.constant 0 : index
      %45 = vector.load %arg9[%c0_22, %c0_23] : memref<8x128xf32, #tpu.memory_space<vmem>>, vector<8x128xf32>
      %c0_24 = arith.constant 0 : index
      %c0_25 = arith.constant 0 : index
      %46 = vector.load %arg7[%c0_24, %c0_25] : memref<8x128xf32, #tpu.memory_space<vmem>>, vector<8x128xf32>
      tpu.vector_store %arg7[%c0_24, %c0_25], %45 {strides = array<i32>} : memref<8x128xf32, #tpu.memory_space<vmem>>, vector<8x128xf32>,
      %c0_26 = arith.constant 0 : index
      %c0_27 = arith.constant 0 : index
      %47 = vector.load %arg10[%c0_26, %c0_27] : memref<8x128xf32, #tpu.memory_space<vmem>>, vector<8x128xf32>
      %c0_28 = arith.constant 0 : index
      %c0_29 = arith.constant 0 : index
      %48 = vector.load %arg8[%c0_28, %c0_29] : memref<8x128xf32, #tpu.memory_space<vmem>>, vector<8x128xf32>
      tpu.vector_store %arg8[%c0_28, %c0_29], %47 {strides = array<i32>} : memref<8x128xf32, #tpu.memory_space<vmem>>, vector<8x128xf32>,
    } else {
    }
    return
  }
  func.func @transform_0(%arg0: i32, %arg1: i32) -> (i32, i32, i32) {
    %c0_i32 = arith.constant 0 : i32
    %c0_i32_0 = arith.constant 0 : i32
    return %arg1, %arg0, %c0_i32 : i32, i32, i32
  }
  func.func @transform_1(%arg0: i32, %arg1: i32) -> (i32, i32) {
    %c0_i32 = arith.constant 0 : i32
    %c0_i32_0 = arith.constant 0 : i32
    return %arg0, %c0_i32 : i32, i32
  }
  func.func @transform_2(%arg0: i32, %arg1: i32) -> (i32, i32) {
    %c0_i32 = arith.constant 0 : i32
    %c0_i32_0 = arith.constant 0 : i32
    return %arg0, %c0_i32 : i32, i32
  }
  func.func @transform_3(%arg0: i32, %arg1: i32) -> (i32, i32) {
    %c0_i32 = arith.constant 0 : i32
    %c0_i32_0 = arith.constant 0 : i32
    %c0_i32_1 = arith.constant 0 : i32
    return %c0_i32, %c0_i32_0 : i32, i32
  }
  func.func @transform_4(%arg0: i32, %arg1: i32) -> (i32, i32) {
    %c0_i32 = arith.constant 0 : i32
    %c0_i32_0 = arith.constant 0 : i32
    %c0_i32_1 = arith.constant 0 : i32
    return %c0_i32, %c0_i32_0 : i32, i32
  }
  func.func @transform_5(%arg0: i32, %arg1: i32) -> (i32, i32) {
    %c0_i32 = arith.constant 0 : i32
    %c0_i32_0 = arith.constant 0 : i32
    return %arg0, %c0_i32 : i32, i32
  }
  func.func @transform_6(%arg0: i32, %arg1: i32) -> (i32, i32) {
    %c0_i32 = arith.constant 0 : i32
    %c0_i32_0 = arith.constant 0 : i32
    return %arg0, %c0_i32 : i32, i32
  }
}

</mosaic_0001>

<bundles_post_ra>
// kernel: _lstm_sequence_impl.1
= control target key start
LH: loop header
LB: loop body
LE: loop exit
PB: predicated region body
PF: predicated region fallthrough
CT: control target
= control target key end

     0   :  { %12 = vsyncpa [#allocation5], 0  ;;  %s480_s24 = smov [#allocation4]   ;;  %s481_s26 = smov 512   ;;  %s539_s0 = inlined_call_operand.vmem [shape: f32[1,8,128], index: 0, kind: input, shape index: {}]   ;;  %s540_s1 = inlined_call_operand.vmem [shape: f32[8,128], index: 1, kind: input, shape index: {}]   ;;  %s541_s2 = inlined_call_operand.vmem [shape: f32[8,128], index: 2, kind: input, shape index: {}]   ;;  %s542_s3 = inlined_call_operand.hbm [shape: f32[256,512], index: 3, kind: input, shape index: {}]   ;;  %s543_s4 = inlined_call_operand.vmem [shape: f32[1,512], index: 4, kind: input, shape index: {}]   ;;  %s544_s5 = inlined_call_operand.vmem [shape: f32[8,128], index: 5, kind: output, shape index: {0}]   ;;  %s545_s6 = inlined_call_operand.vmem [shape: f32[8,128], index: 6, kind: output, shape index: {1}]  }
   0x1   :  { %s23_s23 = sshll.u32 %s542_s3, 4  ;;  %s25_s25 = sshll.u32 %s480_s24, 4  ;;  %s24_s23 = int_to_ptr.hbm [resolvable:$true] %s23_s23  ;;  %s26_s25 = int_to_ptr.vmem [resolvable:$true] %s25_s25 }
   0x2   :  { %s482_s27 = smov 32  }
   0x3   :  { %31 = dma.hbm_to_vmem [thread:$0]  %s24_s23, 16384, %s26_s25, [#allocation5], %s481_s26, %s481_s26, %s482_s27  }
   0x4   :  { %478 = dma.done.wait [#allocation5], 16384  }
   0x5   :  { %479 = vsyncadd [#allocation5], 4294950912  ;;  %v172_v0 = vld [vmem:[#allocation4 + $0x3e0] sm:$0xff]  ;;  %v173_v1 = vld [vmem:[#allocation4 + $0x3e8] sm:$0xff] }
   0x6   :  { %v175_v2 = vld [vmem:[#allocation4 + $0x3f8] sm:$0xff]  ;;  %176 = vmatpush.msra.mxu0 %v172_v0  ;;  %196 = vmatpush.msra.mxu1 %v173_v1  ;;  %v168_v3 = vld [vmem:[#allocation4 + $0x3c0] sm:$0xff]  ;;  %v169_v4 = vld [vmem:[#allocation4 + $0x3c8] sm:$0xff] }
   0x7   :  { %v171_v5 = vld [vmem:[#allocation4 + $0x3d8] sm:$0xff]  ;;  %236 = vmatpush.msra.mxu3 %v175_v2  ;;  %v164_v6 = vld [vmem:[#allocation4 + $0x3a0] sm:$0xff]  ;;  %v165_v7 = vld [vmem:[#allocation4 + $0x3a8] sm:$0xff] }
   0x8   :  { %177 = vmatpush.msra.mxu0 %v168_v3  ;;  %197 = vmatpush.msra.mxu1 %v169_v4  ;;  %v167_v8 = vld [vmem:[#allocation4 + $0x3b8] sm:$0xff]  ;;  %v160_v9 = vld [vmem:[#allocation4 + $0x380] sm:$0xff]  ;;  %v161_v10 = vld [vmem:[#allocation4 + $0x388] sm:$0xff] }
   0x9   :  { %237 = vmatpush.msra.mxu3 %v171_v5  ;;  %v174_v11 = vld [vmem:[#allocation4 + $0x3f0] sm:$0xff]  ;;  %v163_v12 = vld [vmem:[#allocation4 + $0x398] sm:$0xff]  ;;  %v156_v14 = vld [vmem:[#allocation4 + $0x360] sm:$0xff] }
   0xa   :  { %178 = vmatpush.msra.mxu0 %v164_v6  ;;  %198 = vmatpush.msra.mxu1 %v165_v7  ;;  %v170_v13 = vld [vmem:[#allocation4 + $0x3d0] sm:$0xff]  ;;  %v157_v15 = vld [vmem:[#allocation4 + $0x368] sm:$0xff]  ;;  %v159_v16 = vld [vmem:[#allocation4 + $0x378] sm:$0xff] }
   0xb   :  { %238 = vmatpush.msra.mxu3 %v167_v8  ;;  %216 = vmatpush.msra.mxu2 %v174_v11  ;;  %v166_v17 = vld [vmem:[#allocation4 + $0x3b0] sm:$0xff]  ;;  %v152_v18 = vld [vmem:[#allocation4 + $0x340] sm:$0xff]  ;;  %v153_v19 = vld [vmem:[#allocation4 + $0x348] sm:$0xff] }
   0xc   :  { %179 = vmatpush.msra.mxu0 %v160_v9  ;;  %199 = vmatpush.msra.mxu1 %v161_v10  ;;  %v155_v20 = vld [vmem:[#allocation4 + $0x358] sm:$0xff]  ;;  %v162_v21 = vld [vmem:[#allocation4 + $0x390] sm:$0xff]  ;;  %v148_v22 = vld [vmem:[#allocation4 + $0x320] sm:$0xff] }
   0xd   :  { %239 = vmatpush.msra.mxu3 %v163_v12  ;;  %217 = vmatpush.msra.mxu2 %v170_v13  ;;  %v149_v23 = vld [vmem:[#allocation4 + $0x328] sm:$0xff]  ;;  %v151_v24 = vld [vmem:[#allocation4 + $0x338] sm:$0xff]  ;;  %v158_v25 = vld [vmem:[#allocation4 + $0x370] sm:$0xff] }
   0xe   :  { %180 = vmatpush.msra.mxu0 %v156_v14  ;;  %200 = vmatpush.msra.mxu1 %v157_v15  ;;  %v144_v26 = vld [vmem:[#allocation4 + $0x300] sm:$0xff]  ;;  %v145_v27 = vld [vmem:[#allocation4 + $0x308] sm:$0xff]  ;;  %v147_v28 = vld [vmem:[#allocation4 + $0x318] sm:$0xff] }
   0xf   :  { %240 = vmatpush.msra.mxu3 %v159_v16  ;;  %218 = vmatpush.msra.mxu2 %v166_v17  ;;  %v154_v29 = vld [vmem:[#allocation4 + $0x350] sm:$0xff]  ;;  %v140_v30 = vld [vmem:[#allocation4 + $0x2e0] sm:$0xff]  ;;  %v141_v31 = vld [vmem:[#allocation4 + $0x2e8] sm:$0xff] }
  0x10   :  { %181 = vmatpush.msra.mxu0 %v152_v18  ;;  %201 = vmatpush.msra.mxu1 %v153_v19  ;;  %v143_v32 = vld [vmem:[#allocation4 + $0x2f8] sm:$0xff]  ;;  %v150_v33 = vld [vmem:[#allocation4 + $0x330] sm:$0xff]  ;;  %v136_v34 = vld [vmem:[#allocation4 + $0x2c0] sm:$0xff] }
  0x11   :  { %241 = vmatpush.msra.mxu3 %v155_v20  ;;  %219 = vmatpush.msra.mxu2 %v162_v21  ;;  %v137_v35 = vld [vmem:[#allocation4 + $0x2c8] sm:$0xff]  ;;  %v139_v36 = vld [vmem:[#allocation4 + $0x2d8] sm:$0xff]  ;;  %v146_v37 = vld [vmem:[#allocation4 + $0x310] sm:$0xff] }
  0x12   :  { %182 = vmatpush.msra.mxu0 %v148_v22  ;;  %202 = vmatpush.msra.mxu1 %v149_v23  ;;  %v132_v38 = vld [vmem:[#allocation4 + $0x2a0] sm:$0xff]  ;;  %v133_v39 = vld [vmem:[#allocation4 + $0x2a8] sm:$0xff]  ;;  %v135_v40 = vld [vmem:[#allocation4 + $0x2b8] sm:$0xff] }
  0x13   :  { %242 = vmatpush.msra.mxu3 %v151_v24  ;;  %220 = vmatpush.msra.mxu2 %v158_v25  ;;  %v142_v41 = vld [vmem:[#allocation4 + $0x2f0] sm:$0xff]  ;;  %v128_v42 = vld [vmem:[#allocation4 + $0x280] sm:$0xff]  ;;  %v129_v43 = vld [vmem:[#allocation4 + $0x288] sm:$0xff] }
  0x14   :  { %183 = vmatpush.msra.mxu0 %v144_v26  ;;  %203 = vmatpush.msra.mxu1 %v145_v27  ;;  %v131_v44 = vld [vmem:[#allocation4 + $0x298] sm:$0xff]  ;;  %v138_v45 = vld [vmem:[#allocation4 + $0x2d0] sm:$0xff]  ;;  %v124_v46 = vld [vmem:[#allocation4 + $0x260] sm:$0xff] }
  0x15   :  { %243 = vmatpush.msra.mxu3 %v147_v28  ;;  %221 = vmatpush.msra.mxu2 %v154_v29  ;;  %v125_v47 = vld [vmem:[#allocation4 + $0x268] sm:$0xff]  ;;  %v127_v48 = vld [vmem:[#allocation4 + $0x278] sm:$0xff]  ;;  %v134_v49 = vld [vmem:[#allocation4 + $0x2b0] sm:$0xff] }
  0x16   :  { %184 = vmatpush.msra.mxu0 %v140_v30  ;;  %204 = vmatpush.msra.mxu1 %v141_v31  ;;  %v120_v50 = vld [vmem:[#allocation4 + $0x240] sm:$0xff]  ;;  %v121_v51 = vld [vmem:[#allocation4 + $0x248] sm:$0xff]  ;;  %v123_v52 = vld [vmem:[#allocation4 + $0x258] sm:$0xff] }
  0x17   :  { %244 = vmatpush.msra.mxu3 %v143_v32  ;;  %222 = vmatpush.msra.mxu2 %v150_v33  ;;  %v130_v53 = vld [vmem:[#allocation4 + $0x290] sm:$0xff]  ;;  %v116_v54 = vld [vmem:[#allocation4 + $0x220] sm:$0xff]  ;;  %v117_v55 = vld [vmem:[#allocation4 + $0x228] sm:$0xff] }
  0x18   :  { %185 = vmatpush.msra.mxu0 %v136_v34  ;;  %205 = vmatpush.msra.mxu1 %v137_v35  ;;  %v119_v56 = vld [vmem:[#allocation4 + $0x238] sm:$0xff]  ;;  %v126_v57 = vld [vmem:[#allocation4 + $0x270] sm:$0xff]  ;;  %v112_v58 = vld [vmem:[#allocation4 + $0x200] sm:$0xff] }
  0x19   :  { %245 = vmatpush.msra.mxu3 %v139_v36  ;;  %223 = vmatpush.msra.mxu2 %v146_v37  ;;  %v113_v59 = vld [vmem:[#allocation4 + $0x208] sm:$0xff]  ;;  %v115_v60 = vld [vmem:[#allocation4 + $0x218] sm:$0xff]  ;;  %v107_v61 = vld [vmem:[#allocation4 + $0x1e0] sm:$0xff] }
  0x1a   :  { %186 = vmatpush.msra.mxu0 %v132_v38  ;;  %206 = vmatpush.msra.mxu1 %v133_v39  ;;  %v108_v62 = vld [vmem:[#allocation4 + $0x1e8] sm:$0xff]  ;;  %v110_v63 = vld [vmem:[#allocation4 + $0x1f8] sm:$0xff]  ;;  %v122_v0 = vld [vmem:[#allocation4 + $0x250] sm:$0xff] }
  0x1b   :  { %246 = vmatpush.msra.mxu3 %v135_v40  ;;  %224 = vmatpush.msra.mxu2 %v142_v41  ;;  %v103_v1 = vld [vmem:[#allocation4 + $0x1c0] sm:$0xff]  ;;  %v104_v2 = vld [vmem:[#allocation4 + $0x1c8] sm:$0xff]  ;;  %v106_v3 = vld [vmem:[#allocation4 + $0x1d8] sm:$0xff] }
  0x1c   :  { %187 = vmatpush.msra.mxu0 %v128_v42  ;;  %207 = vmatpush.msra.mxu1 %v129_v43  ;;  %v118_v4 = vld [vmem:[#allocation4 + $0x230] sm:$0xff]  ;;  %v99_v5 = vld [vmem:[#allocation4 + $0x1a0] sm:$0xff]  ;;  %v100_v6 = vld [vmem:[#allocation4 + $0x1a8] sm:$0xff] }
  0x1d   :  { %247 = vmatpush.msra.mxu3 %v131_v44  ;;  %225 = vmatpush.msra.mxu2 %v138_v45  ;;  %v102_v7 = vld [vmem:[#allocation4 + $0x1b8] sm:$0xff]  ;;  %v114_v8 = vld [vmem:[#allocation4 + $0x210] sm:$0xff]  ;;  %v95_v9 = vld [vmem:[#allocation4 + $0x180] sm:$0xff] }
  0x1e   :  { %188 = vmatpush.msra.mxu0 %v124_v46  ;;  %208 = vmatpush.msra.mxu1 %v125_v47  ;;  %v96_v10 = vld [vmem:[#allocation4 + $0x188] sm:$0xff]  ;;  %v98_v11 = vld [vmem:[#allocation4 + $0x198] sm:$0xff]  ;;  %v109_v12 = vld [vmem:[#allocation4 + $0x1f0] sm:$0xff] }
  0x1f   :  { %248 = vmatpush.msra.mxu3 %v127_v48  ;;  %226 = vmatpush.msra.mxu2 %v134_v49  ;;  %v91_v13 = vld [vmem:[#allocation4 + $0x160] sm:$0xff]  ;;  %v92_v14 = vld [vmem:[#allocation4 + $0x168] sm:$0xff]  ;;  %v94_v15 = vld [vmem:[#allocation4 + $0x178] sm:$0xff] }
  0x20   :  { %189 = vmatpush.msra.mxu0 %v120_v50  ;;  %209 = vmatpush.msra.mxu1 %v121_v51  ;;  %v105_v16 = vld [vmem:[#allocation4 + $0x1d0] sm:$0xff]  ;;  %v87_v17 = vld [vmem:[#allocation4 + $0x140] sm:$0xff]  ;;  %v88_v18 = vld [vmem:[#allocation4 + $0x148] sm:$0xff] }
  0x21   :  { %249 = vmatpush.msra.mxu3 %v123_v52  ;;  %227 = vmatpush.msra.mxu2 %v130_v53  ;;  %v90_v19 = vld [vmem:[#allocation4 + $0x158] sm:$0xff]  ;;  %v101_v20 = vld [vmem:[#allocation4 + $0x1b0] sm:$0xff]  ;;  %v83_v21 = vld [vmem:[#allocation4 + $0x120] sm:$0xff] }
  0x22   :  { %190 = vmatpush.msra.mxu0 %v116_v54  ;;  %210 = vmatpush.msra.mxu1 %v117_v55  ;;  %v84_v22 = vld [vmem:[#allocation4 + $0x128] sm:$0xff]  ;;  %v86_v23 = vld [vmem:[#allocation4 + $0x138] sm:$0xff]  ;;  %v97_v24 = vld [vmem:[#allocation4 + $0x190] sm:$0xff] }
  0x23   :  { %250 = vmatpush.msra.mxu3 %v119_v56  ;;  %228 = vmatpush.msra.mxu2 %v126_v57  ;;  %v79_v25 = vld [vmem:[#allocation4 + $0x100] sm:$0xff]  ;;  %v80_v26 = vld [vmem:[#allocation4 + $0x108] sm:$0xff]  ;;  %v82_v27 = vld [vmem:[#allocation4 + $0x118] sm:$0xff] }
  0x24   :  { %191 = vmatpush.msra.mxu0 %v112_v58  ;;  %211 = vmatpush.msra.mxu1 %v113_v59  ;;  %v93_v28 = vld [vmem:[#allocation4 + $0x170] sm:$0xff]  ;;  %v75_v29 = vld [vmem:[#allocation4 + $0xe0] sm:$0xff]  ;;  %v76_v30 = vld [vmem:[#allocation4 + $0xe8] sm:$0xff] }
  0x25   :  { %251 = vmatpush.msra.mxu3 %v115_v60  ;;  %229 = vmatpush.msra.mxu2 %v122_v0  ;;  %v78_v31 = vld [vmem:[#allocation4 + $0xf8] sm:$0xff]  ;;  %v89_v32 = vld [vmem:[#allocation4 + $0x150] sm:$0xff]  ;;  %v71_v33 = vld [vmem:[#allocation4 + $0xc0] sm:$0xff] }
  0x26   :  { %256 = vmatpush.msrb.mxu0 %v107_v61  ;;  %276 = vmatpush.msrb.mxu1 %v108_v62  ;;  %v72_v34 = vld [vmem:[#allocation4 + $0xc8] sm:$0xff]  ;;  %v74_v35 = vld [vmem:[#allocation4 + $0xd8] sm:$0xff]  ;;  %v85_v36 = vld [vmem:[#allocation4 + $0x130] sm:$0xff] }
  0x27   :  { %316 = vmatpush.msrb.mxu3 %v110_v63  ;;  %230 = vmatpush.msra.mxu2 %v118_v4  ;;  %v67_v37 = vld [vmem:[#allocation4 + $0xa0] sm:$0xff]  ;;  %v68_v38 = vld [vmem:[#allocation4 + $0xa8] sm:$0xff]  ;;  %v70_v39 = vld [vmem:[#allocation4 + $0xb8] sm:$0xff] }
  0x28   :  { %257 = vmatpush.msrb.mxu0 %v103_v1  ;;  %277 = vmatpush.msrb.mxu1 %v104_v2  ;;  %v81_v40 = vld [vmem:[#allocation4 + $0x110] sm:$0xff]  ;;  %v63_v41 = vld [vmem:[#allocation4 + $0x80] sm:$0xff]  ;;  %v64_v42 = vld [vmem:[#allocation4 + $0x88] sm:$0xff] }
  0x29   :  { %317 = vmatpush.msrb.mxu3 %v106_v3  ;;  %231 = vmatpush.msra.mxu2 %v114_v8  ;;  %v66_v43 = vld [vmem:[#allocation4 + $0x98] sm:$0xff]  ;;  %v42_v44 = vld [vmem:[%s540_s1] sm:$0xff]  ;;  %v77_v45 = vld [vmem:[#allocation4 + $0xf0] sm:$0xff] }
  0x2a   :  { %258 = vmatpush.msrb.mxu0 %v99_v5  ;;  %278 = vmatpush.msrb.mxu1 %v100_v6  ;;  %v59_v46 = vld [vmem:[#allocation4 + $0x60] sm:$0xff]  ;;  %v60_v47 = vld [vmem:[#allocation4 + $0x68] sm:$0xff]  ;;  %v62_v48 = vld [vmem:[#allocation4 + $0x78] sm:$0xff] }
  0x2b   :  { %318 = vmatpush.msrb.mxu3 %v102_v7  ;;  %296 = vmatpush.msrb.mxu2 %v109_v12  ;;  %v73_v49 = vld [vmem:[#allocation4 + $0xd0] sm:$0xff]  ;;  %v55_v50 = vld [vmem:[#allocation4 + $0x40] sm:$0xff]  ;;  %v56_v51 = vld [vmem:[#allocation4 + $0x48] sm:$0xff] }
  0x2c   :  { %259 = vmatpush.msrb.mxu0 %v95_v9  ;;  %279 = vmatpush.msrb.mxu1 %v96_v10  ;;  %v58_v52 = vld [vmem:[#allocation4 + $0x58] sm:$0xff]  ;;  %v69_v53 = vld [vmem:[#allocation4 + $0xb0] sm:$0xff]  ;;  %v51_v54 = vld [vmem:[#allocation4 + $0x20] sm:$0xff] }
  0x2d   :  { %319 = vmatpush.msrb.mxu3 %v98_v11  ;;  %297 = vmatpush.msrb.mxu2 %v105_v16  ;;  %v52_v55 = vld [vmem:[#allocation4 + $0x28] sm:$0xff]  ;;  %v54_v56 = vld [vmem:[#allocation4 + $0x38] sm:$0xff]  ;;  %v65_v57 = vld [vmem:[#allocation4 + $0x90] sm:$0xff] }
  0x2e   :  { %260 = vmatpush.msrb.mxu0 %v91_v13  ;;  %280 = vmatpush.msrb.mxu1 %v92_v14  ;;  %v47_v58 = vld [vmem:[#allocation4] sm:$0xff]  ;;  %v48_v59 = vld [vmem:[#allocation4 + $0x8] sm:$0xff]  ;;  %v50_v60 = vld [vmem:[#allocation4 + $0x18] sm:$0xff] }
  0x2f   :  { %320 = vmatpush.msrb.mxu3 %v94_v15  ;;  %298 = vmatpush.msrb.mxu2 %v101_v20  ;;  %v46_v61 = vld [vmem:[%s539_s0] sm:$0xff]  ;;  %v61_v62 = vld [vmem:[#allocation4 + $0x70] sm:$0xff] }
  0x30   :  { %261 = vmatpush.msrb.mxu0 %v87_v17  ;;  %281 = vmatpush.msrb.mxu1 %v88_v18  ;;  %v57_v63 = vld [vmem:[#allocation4 + $0x50] sm:$0xff]  ;;  %v336_v4 = vld [vmem:[%s543_s4] sm:$0xf] }
  0x31   :  { %321 = vmatpush.msrb.mxu3 %v90_v19  ;;  %299 = vmatpush.msrb.mxu2 %v97_v24  ;;  %v53_v0 = vld [vmem:[#allocation4 + $0x30] sm:$0xff]  ;;  %v338_v6 = vperm.slane %v336_v4, 0  ;;  %v339_v7 = vperm.slane %v336_v4, 1  ;;  %v341_v17 = vperm.slane %v336_v4, 3 }
  0x32   :  { %262 = vmatpush.msrb.mxu0 %v83_v21  ;;  %282 = vmatpush.msrb.mxu1 %v84_v22  ;;  %v49_v1 = vld [vmem:[#allocation4 + $0x10] sm:$0xff] }
  0x33   :  { %322 = vmatpush.msrb.mxu3 %v86_v23  ;;  %300 = vmatpush.msrb.mxu2 %v93_v28  ;;  %v340_v28 = vperm.slane %v336_v4, 2 }
  0x34   :  { %263 = vmatpush.msrb.mxu0 %v79_v25  ;;  %283 = vmatpush.msrb.mxu1 %v80_v26 }
  0x35   :  { %323 = vmatpush.msrb.mxu3 %v82_v27  ;;  %301 = vmatpush.msrb.mxu2 %v89_v32 }
  0x36   :  { %264 = vmatpush.msrb.mxu0 %v75_v29  ;;  %284 = vmatpush.msrb.mxu1 %v76_v30 }
  0x37   :  { %324 = vmatpush.msrb.mxu3 %v78_v31  ;;  %302 = vmatpush.msrb.mxu2 %v85_v36 }
  0x38   :  { %265 = vmatpush.msrb.mxu0 %v71_v33  ;;  %285 = vmatpush.msrb.mxu1 %v72_v34 }
  0x39   :  { %325 = vmatpush.msrb.mxu3 %v74_v35  ;;  %303 = vmatpush.msrb.mxu2 %v81_v40 }
  0x3a   :  { %266 = vmatpush.msrb.mxu0 %v67_v37  ;;  %286 = vmatpush.msrb.mxu1 %v68_v38 }
  0x3b   :  { %326 = vmatpush.msrb.mxu3 %v70_v39  ;;  %192 = vmatmul.f32.vlgmr.msra.gmra.mxu0 %v42_v44 }
  0x3c   :  { %267 = vmatpush.msrb.mxu0 %v63_v41  ;;  %287 = vmatpush.msrb.mxu1 %v64_v42 }
  0x3d   :  { %327 = vmatpush.msrb.mxu3 %v66_v43  ;;  %212 = vmatmul.f32.vlgmr.msra.gmra.mxu1 %v42_v44 }
  0x3e   :  { %252 = vmatmul.f32.vlgmr.msra.gmra.mxu3 %v42_v44  ;;  %304 = vmatpush.msrb.mxu2 %v77_v45 }
  0x3f   :  { %268 = vmatpush.msrb.mxu0 %v59_v46  ;;  %288 = vmatpush.msrb.mxu1 %v60_v47 }
  0x40   :  { %328 = vmatpush.msrb.mxu3 %v62_v48  ;;  %305 = vmatpush.msrb.mxu2 %v73_v49 }
  0x41   :  { %269 = vmatpush.msrb.mxu0 %v55_v50  ;;  %289 = vmatpush.msrb.mxu1 %v56_v51  ;;  %v44_v50 = vld [vmem:[%s541_s2] sm:$0xff] }
  0x42   :  { %329 = vmatpush.msrb.mxu3 %v58_v52  ;;  %306 = vmatpush.msrb.mxu2 %v69_v53 }
  0x43   :  { %270 = vmatpush.msrb.mxu0 %v51_v54  ;;  %290 = vmatpush.msrb.mxu1 %v52_v55 }
  0x44   :  { %330 = vmatpush.msrb.mxu3 %v54_v56  ;;  %307 = vmatpush.msrb.mxu2 %v65_v57 }
  0x45   :  { %232 = vmatmul.f32.vlgmr.msra.gmra.mxu2 %v42_v44  ;;  %271 = vmatpush.msrb.mxu0 %v47_v58 }
  0x46   :  { %291 = vmatpush.msrb.mxu1 %v48_v59  ;;  %331 = vmatpush.msrb.mxu3 %v50_v60 }
  0x47   :  { %272 = vmatmul.f32.vlgmr.msrb.gmra.mxu0 %v46_v61  ;;  %292 = vmatmul.f32.vlgmr.msrb.gmra.mxu1 %v46_v61 }
  0x48   :  { %308 = vmatpush.msrb.mxu2 %v61_v62  ;;  %332 = vmatmul.f32.vlgmr.msrb.gmra.mxu3 %v46_v61 }
  0x4a   :  { %309 = vmatpush.msrb.mxu2 %v57_v63 }
  0x4c   :  { %310 = vmatpush.msrb.mxu2 %v53_v0 }
  0x4e   :  { %311 = vmatpush.msrb.mxu2 %v49_v1 }
  0x4f   :  { %312 = vmatmul.f32.vlgmr.msrb.gmra.mxu2 %v46_v61 }
  0xb8   :  { %v193_v2 = vpop.f32.mrf.mxu0 }
  0xba   :  { %v213_v3 = vpop.f32.mrf.mxu1 }
  0xc1   :  { %v253_v5 = vpop.f32.mrf.mxu3 }
  0xc4   :  { %v273_v8 = vpop.f32.mrf.mxu0  ;;  %v293_v9 = vpop.f32.mrf.mxu1 }
  0xc5   :  { %v274_v10 = vadd.f32 %v273_v8, %v193_v2  ;;  %v294_v11 = vadd.f32 %v293_v9, %v213_v3 }
  0xc7   :  { %v346_v12 = vadd.f32 %v338_v6, %v274_v10  ;;  %v347_v13 = vadd.f32 %v339_v7, %v294_v11 }
  0xc8   :  { %v233_v16 = vpop.f32.mrf.mxu2 }
  0xc9   :  { %v432_v14 = vmul.f32 -1.442695, %v346_v12  ;;  %v433_v15 = vmul.f32 -1.442695, %v347_v13 }
  0xcb   :  { %438 = vpow2.f32 %v432_v14  ;;  %v333_v18 = vpop.f32.mrf.mxu3 }
  0xcc   :  { %440 = vpow2.f32 %v433_v15  ;;  %v334_v19 = vadd.f32 %v333_v18, %v253_v5 }
  0xce   :  { %v349_v20 = vadd.f32 %v341_v17, %v334_v19 }
  0xd0   :  { %v434_v21 = vmul.f32 -1.442695, %v349_v20 }
  0xd1   :  { %v439_v22 = vpop.eup %438 }
  0xd2   :  { %v441_v23 = vpop.eup %440  ;;  %v353_v24 = vadd.f32 1.0, %v439_v22  ;;  %442 = vpow2.f32 %v434_v21  ;;  %v313_v26 = vpop.f32.mrf.mxu2 }
  0xd3   :  { %v372_v25 = vadd.f32 1.0, %v441_v23  ;;  %v314_v27 = vadd.f32 %v313_v26, %v233_v16 }
  0xd4   :  { %444 = vrcp.f32 %v353_v24  ;;  %v365_v38 = vand.u32 2147483648, %v353_v24  ;;  %v363_v41 = vand.u32 2147483647, %v353_v24  ;;  %vm359_vm2 = vweird.f32 %v353_v24 }
  0xd5   :  { %446 = vrcp.f32 %v372_v25  ;;  %v348_v32 = vadd.f32 %v340_v28, %v314_v27  ;;  %v384_v39 = vand.u32 2147483648, %v372_v25  ;;  %v382_v43 = vand.u32 2147483647, %v372_v25 }
  0xd6   :  { %vm378_vm3 = vweird.f32 %v372_v25  ;;  %v366_v47 = vor.u32 1.1754944e-38, %v365_v38  ;;  %vm364_vm6 = vcmp.eq.f32.partialorder %v363_v41, 8.507059e+37 }
  0xd7   :  { %v385_v49 = vor.u32 1.1754944e-38, %v384_v39  ;;  %vm383_vm7 = vcmp.eq.f32.partialorder %v382_v43, 8.507059e+37 }
  0xd8   :  { %v443_v29 = vpop.eup %442 }
  0xd9   :  { %v392_v30 = vadd.f32 1.0, %v443_v29 }
  0xda   :  { %v445_v31 = vpop.eup %444 }
  0xdb   :  { %v447_v33 = vpop.eup %446  ;;  %v355_v34 = vmul.f32 %v445_v31, %v353_v24  ;;  %448 = vrcp.f32 %v392_v30  ;;  %vm360_vm0 = vweird.f32 %v445_v31  ;;  %v404_v62 = vand.u32 2147483648, %v392_v30 }
  0xdc   :  { %v374_v35 = vmul.f32 %v447_v33, %v372_v25  ;;  %450 = vtanh.f32 %v348_v32  ;;  %vm379_vm1 = vweird.f32 %v447_v33  ;;  %vm361_vm4 = vmor %vm359_vm2, %vm360_vm0  ;;  %vm398_vm9 = vweird.f32 %v392_v30 }
  0xdd   :  { %v356_v36 = vsub.f32 1.0, %v355_v34  ;;  %vm380_vm5 = vmor %vm378_vm3, %vm379_vm1  ;;  %v402_v63 = vand.u32 2147483647, %v392_v30  ;;  %v405_v1 = vor.u32 1.1754944e-38, %v404_v62 }
  0xde   :  { %v375_v37 = vsub.f32 1.0, %v374_v35 }
  0xdf   :  { %v357_v40 = vmul.f32 %v445_v31, %v356_v36  ;;  %vm403_vm11 = vcmp.eq.f32.partialorder %v402_v63, 8.507059e+37 }
  0xe0   :  { %v376_v42 = vmul.f32 %v447_v33, %v375_v37 }
  0xe1   :  { %v449_v44 = vpop.eup %448  ;;  %v358_v45 = vadd.f32 %v445_v31, %v357_v40 }
  0xe2   :  { %v394_v46 = vmul.f32 %v449_v44, %v392_v30  ;;  %v377_v48 = vadd.f32 %v447_v33, %v376_v42  ;;  %v451_v52 = vpop.eup %450  ;;  %vm399_vm8 = vweird.f32 %v449_v44 }
  0xe3   :  { %v362_v51 = vsel %vm361_vm4, %v445_v31, %v358_v45  ;;  %vm400_vm10 = vmor %vm398_vm9, %vm399_vm8 }
  0xe4   :  { %v395_v53 = vsub.f32 1.0, %v394_v46  ;;  %v367_v54 = vsel %vm364_vm6, %v366_v47, %v362_v51  ;;  %v381_v55 = vsel %vm380_vm5, %v447_v33, %v377_v48 }
  0xe5   :  { %v386_v56 = vsel %vm383_vm7, %v385_v49, %v381_v55  ;;  %v410_v57 = vmul.f32 %v451_v52, %v367_v54 }
  0xe6   :  { %v396_v58 = vmul.f32 %v449_v44, %v395_v53  ;;  %v409_v59 = vmul.f32 %v386_v56, %v44_v50 }
  0xe8   :  { %v411_v60 = vadd.f32 %v410_v57, %v409_v59  ;;  %v397_v61 = vadd.f32 %v449_v44, %v396_v58 }
  0xea   :  { %452 = vtanh.f32 %v411_v60  ;;  %422 = vst [vmem:[%s545_s6] sm:$0xff] %v411_v60  ;;  %v401_v0 = vsel %vm400_vm10, %v449_v44, %v397_v61 }
  0xeb   :  { %v406_v3 = vsel %vm403_vm11, %v405_v1, %v401_v0 }
  0xf0   :  { %v453_v2 = vpop.eup %452 }
  0xf1   :  { %v413_v4 = vmul.f32 %v453_v2, %v406_v3 }
  0xf3   :  { %420 = vst [vmem:[%s544_s5] sm:$0xff] %v413_v4 }
  0xf4   :  { %431 = vsyncpa [#allocation5], 1 }

// kernel: _lstm_sequence_impl.1
= control target key start
LH: loop header
LB: loop body
LE: loop exit
PB: predicated region body
PF: predicated region fallthrough
CT: control target
= control target key end

     0   :  { %12 = vsyncpa [#allocation5], 0  ;;  %s480_s24 = smov [#allocation4]   ;;  %s481_s26 = smov 512   ;;  %s539_s0 = inlined_call_operand.vmem [shape: f32[1,8,128], index: 0, kind: input, shape index: {}]   ;;  %s540_s1 = inlined_call_operand.vmem [shape: f32[8,128], index: 1, kind: input, shape index: {}]   ;;  %s541_s2 = inlined_call_operand.vmem [shape: f32[8,128], index: 2, kind: input, shape index: {}]   ;;  %s542_s3 = inlined_call_operand.hbm [shape: f32[256,512], index: 3, kind: input, shape index: {}]   ;;  %s543_s4 = inlined_call_operand.vmem [shape: f32[1,512], index: 4, kind: input, shape index: {}]   ;;  %s544_s5 = inlined_call_operand.vmem [shape: f32[8,128], index: 5, kind: output, shape index: {0}]   ;;  %s545_s6 = inlined_call_operand.vmem [shape: f32[8,128], index: 6, kind: output, shape index: {1}]  }
   0x1   :  { %s23_s23 = sshll.u32 %s542_s3, 4  ;;  %s25_s25 = sshll.u32 %s480_s24, 4  ;;  %s24_s23 = int_to_ptr.hbm [resolvable:$true] %s23_s23  ;;  %s26_s25 = int_to_ptr.vmem [resolvable:$true] %s25_s25 }
   0x2   :  { %s482_s27 = smov 32  }
   0x3   :  { %31 = dma.hbm_to_vmem [thread:$0]  %s24_s23, 16384, %s26_s25, [#allocation5], %s481_s26, %s481_s26, %s482_s27  }
   0x4   :  { %478 = dma.done.wait [#allocation5], 16384  }
   0x5   :  { %479 = vsyncadd [#allocation5], 4294950912  ;;  %v172_v0 = vld [vmem:[#allocation4 + $0x3e0] sm:$0xff]  ;;  %v173_v1 = vld [vmem:[#allocation4 + $0x3e8] sm:$0xff] }
   0x6   :  { %v175_v2 = vld [vmem:[#allocation4 + $0x3f8] sm:$0xff]  ;;  %176 = vmatpush.msra.mxu0 %v172_v0  ;;  %196 = vmatpush.msra.mxu1 %v173_v1  ;;  %v168_v3 = vld [vmem:[#allocation4 + $0x3c0] sm:$0xff]  ;;  %v169_v4 = vld [vmem:[#allocation4 + $0x3c8] sm:$0xff] }
   0x7   :  { %v171_v5 = vld [vmem:[#allocation4 + $0x3d8] sm:$0xff]  ;;  %236 = vmatpush.msra.mxu3 %v175_v2  ;;  %v164_v6 = vld [vmem:[#allocation4 + $0x3a0] sm:$0xff]  ;;  %v165_v7 = vld [vmem:[#allocation4 + $0x3a8] sm:$0xff] }
   0x8   :  { %177 = vmatpush.msra.mxu0 %v168_v3  ;;  %197 = vmatpush.msra.mxu1 %v169_v4  ;;  %v167_v8 = vld [vmem:[#allocation4 + $0x3b8] sm:$0xff]  ;;  %v160_v9 = vld [vmem:[#allocation4 + $0x380] sm:$0xff]  ;;  %v161_v10 = vld [vmem:[#allocation4 + $0x388] sm:$0xff] }
   0x9   :  { %237 = vmatpush.msra.mxu3 %v171_v5  ;;  %v174_v11 = vld [vmem:[#allocation4 + $0x3f0] sm:$0xff]  ;;  %v163_v12 = vld [vmem:[#allocation4 + $0x398] sm:$0xff]  ;;  %v156_v14 = vld [vmem:[#allocation4 + $0x360] sm:$0xff] }
   0xa   :  { %178 = vmatpush.msra.mxu0 %v164_v6  ;;  %198 = vmatpush.msra.mxu1 %v165_v7  ;;  %v170_v13 = vld [vmem:[#allocation4 + $0x3d0] sm:$0xff]  ;;  %v157_v15 = vld [vmem:[#allocation4 + $0x368] sm:$0xff]  ;;  %v159_v16 = vld [vmem:[#allocation4 + $0x378] sm:$0xff] }
   0xb   :  { %238 = vmatpush.msra.mxu3 %v167_v8  ;;  %216 = vmatpush.msra.mxu2 %v174_v11  ;;  %v166_v17 = vld [vmem:[#allocation4 + $0x3b0] sm:$0xff]  ;;  %v152_v18 = vld [vmem:[#allocation4 + $0x340] sm:$0xff]  ;;  %v153_v19 = vld [vmem:[#allocation4 + $0x348] sm:$0xff] }
   0xc   :  { %179 = vmatpush.msra.mxu0 %v160_v9  ;;  %199 = vmatpush.msra.mxu1 %v161_v10  ;;  %v155_v20 = vld [vmem:[#allocation4 + $0x358] sm:$0xff]  ;;  %v162_v21 = vld [vmem:[#allocation4 + $0x390] sm:$0xff]  ;;  %v148_v22 = vld [vmem:[#allocation4 + $0x320] sm:$0xff] }
   0xd   :  { %239 = vmatpush.msra.mxu3 %v163_v12  ;;  %217 = vmatpush.msra.mxu2 %v170_v13  ;;  %v149_v23 = vld [vmem:[#allocation4 + $0x328] sm:$0xff]  ;;  %v151_v24 = vld [vmem:[#allocation4 + $0x338] sm:$0xff]  ;;  %v158_v25 = vld [vmem:[#allocation4 + $0x370] sm:$0xff] }
   0xe   :  { %180 = vmatpush.msra.mxu0 %v156_v14  ;;  %200 = vmatpush.msra.mxu1 %v157_v15  ;;  %v144_v26 = vld [vmem:[#allocation4 + $0x300] sm:$0xff]  ;;  %v145_v27 = vld [vmem:[#allocation4 + $0x308] sm:$0xff]  ;;  %v147_v28 = vld [vmem:[#allocation4 + $0x318] sm:$0xff] }
   0xf   :  { %240 = vmatpush.msra.mxu3 %v159_v16  ;;  %218 = vmatpush.msra.mxu2 %v166_v17  ;;  %v154_v29 = vld [vmem:[#allocation4 + $0x350] sm:$0xff]  ;;  %v140_v30 = vld [vmem:[#allocation4 + $0x2e0] sm:$0xff]  ;;  %v141_v31 = vld [vmem:[#allocation4 + $0x2e8] sm:$0xff] }
  0x10   :  { %181 = vmatpush.msra.mxu0 %v152_v18  ;;  %201 = vmatpush.msra.mxu1 %v153_v19  ;;  %v143_v32 = vld [vmem:[#allocation4 + $0x2f8] sm:$0xff]  ;;  %v150_v33 = vld [vmem:[#allocation4 + $0x330] sm:$0xff]  ;;  %v136_v34 = vld [vmem:[#allocation4 + $0x2c0] sm:$0xff] }
  0x11   :  { %241 = vmatpush.msra.mxu3 %v155_v20  ;;  %219 = vmatpush.msra.mxu2 %v162_v21  ;;  %v137_v35 = vld [vmem:[#allocation4 + $0x2c8] sm:$0xff]  ;;  %v139_v36 = vld [vmem:[#allocation4 + $0x2d8] sm:$0xff]  ;;  %v146_v37 = vld [vmem:[#allocation4 + $0x310] sm:$0xff] }
  0x12   :  { %182 = vmatpush.msra.mxu0 %v148_v22  ;;  %202 = vmatpush.msra.mxu1 %v149_v23  ;;  %v132_v38 = vld [vmem:[#allocation4 + $0x2a0] sm:$0xff]  ;;  %v133_v39 = vld [vmem:[#allocation4 + $0x2a8] sm:$0xff]  ;;  %v135_v40 = vld [vmem:[#allocation4 + $0x2b8] sm:$0xff] }
  0x13   :  { %242 = vmatpush.msra.mxu3 %v151_v24  ;;  %220 = vmatpush.msra.mxu2 %v158_v25  ;;  %v142_v41 = vld [vmem:[#allocation4 + $0x2f0] sm:$0xff]  ;;  %v128_v42 = vld [vmem:[#allocation4 + $0x280] sm:$0xff]  ;;  %v129_v43 = vld [vmem:[#allocation4 + $0x288] sm:$0xff] }
  0x14   :  { %183 = vmatpush.msra.mxu0 %v144_v26  ;;  %203 = vmatpush.msra.mxu1 %v145_v27  ;;  %v131_v44 = vld [vmem:[#allocation4 + $0x298] sm:$0xff]  ;;  %v138_v45 = vld [vmem:[#allocation4 + $0x2d0] sm:$0xff]  ;;  %v124_v46 = vld [vmem:[#allocation4 + $0x260] sm:$0xff] }
  0x15   :  { %243 = vmatpush.msra.mxu3 %v147_v28  ;;  %221 = vmatpush.msra.mxu2 %v154_v29  ;;  %v125_v47 = vld [vmem:[#allocation4 + $0x268] sm:$0xff]  ;;  %v127_v48 = vld [vmem:[#allocation4 + $0x278] sm:$0xff]  ;;  %v134_v49 = vld [vmem:[#allocation4 + $0x2b0] sm:$0xff] }
  0x16   :  { %184 = vmatpush.msra.mxu0 %v140_v30  ;;  %204 = vmatpush.msra.mxu1 %v141_v31  ;;  %v120_v50 = vld [vmem:[#allocation4 + $0x240] sm:$0xff]  ;;  %v121_v51 = vld [vmem:[#allocation4 + $0x248] sm:$0xff]  ;;  %v123_v52 = vld [vmem:[#allocation4 + $0x258] sm:$0xff] }
  0x17   :  { %244 = vmatpush.msra.mxu3 %v143_v32  ;;  %222 = vmatpush.msra.mxu2 %v150_v33  ;;  %v130_v53 = vld [vmem:[#allocation4 + $0x290] sm:$0xff]  ;;  %v116_v54 = vld [vmem:[#allocation4 + $0x220] sm:$0xff]  ;;  %v117_v55 = vld [vmem:[#allocation4 + $0x228] sm:$0xff] }
  0x18   :  { %185 = vmatpush.msra.mxu0 %v136_v34  ;;  %205 = vmatpush.msra.mxu1 %v137_v35  ;;  %v119_v56 = vld [vmem:[#allocation4 + $0x238] sm:$0xff]  ;;  %v126_v57 = vld [vmem:[#allocation4 + $0x270] sm:$0xff]  ;;  %v112_v58 = vld [vmem:[#allocation4 + $0x200] sm:$0xff] }
  0x19   :  { %245 = vmatpush.msra.mxu3 %v139_v36  ;;  %223 = vmatpush.msra.mxu2 %v146_v37  ;;  %v113_v59 = vld [vmem:[#allocation4 + $0x208] sm:$0xff]  ;;  %v115_v60 = vld [vmem:[#allocation4 + $0x218] sm:$0xff]  ;;  %v107_v61 = vld [vmem:[#allocation4 + $0x1e0] sm:$0xff] }
  0x1a   :  { %186 = vmatpush.msra.mxu0 %v132_v38  ;;  %206 = vmatpush.msra.mxu1 %v133_v39  ;;  %v108_v62 = vld [vmem:[#allocation4 + $0x1e8] sm:$0xff]  ;;  %v110_v63 = vld [vmem:[#allocation4 + $0x1f8] sm:$0xff]  ;;  %v122_v0 = vld [vmem:[#allocation4 + $0x250] sm:$0xff] }
  0x1b   :  { %246 = vmatpush.msra.mxu3 %v135_v40  ;;  %224 = vmatpush.msra.mxu2 %v142_v41  ;;  %v103_v1 = vld [vmem:[#allocation4 + $0x1c0] sm:$0xff]  ;;  %v104_v2 = vld [vmem:[#allocation4 + $0x1c8] sm:$0xff]  ;;  %v106_v3 = vld [vmem:[#allocation4 + $0x1d8] sm:$0xff] }
  0x1c   :  { %187 = vmatpush.msra.mxu0 %v128_v42  ;;  %207 = vmatpush.msra.mxu1 %v129_v43  ;;  %v118_v4 = vld [vmem:[#allocation4 + $0x230] sm:$0xff]  ;;  %v99_v5 = vld [vmem:[#allocation4 + $0x1a0] sm:$0xff]  ;;  %v100_v6 = vld [vmem:[#allocation4 + $0x1a8] sm:$0xff] }
  0x1d   :  { %247 = vmatpush.msra.mxu3 %v131_v44  ;;  %225 = vmatpush.msra.mxu2 %v138_v45  ;;  %v102_v7 = vld [vmem:[#allocation4 + $0x1b8] sm:$0xff]  ;;  %v114_v8 = vld [vmem:[#allocation4 + $0x210] sm:$0xff]  ;;  %v95_v9 = vld [vmem:[#allocation4 + $0x180] sm:$0xff] }
  0x1e   :  { %188 = vmatpush.msra.mxu0 %v124_v46  ;;  %208 = vmatpush.msra.mxu1 %v125_v47  ;;  %v96_v10 = vld [vmem:[#allocation4 + $0x188] sm:$0xff]  ;;  %v98_v11 = vld [vmem:[#allocation4 + $0x198] sm:$0xff]  ;;  %v109_v12 = vld [vmem:[#allocation4 + $0x1f0] sm:$0xff] }
  0x1f   :  { %248 = vmatpush.msra.mxu3 %v127_v48  ;;  %226 = vmatpush.msra.mxu2 %v134_v49  ;;  %v91_v13 = vld [vmem:[#allocation4 + $0x160] sm:$0xff]  ;;  %v92_v14 = vld [vmem:[#allocation4 + $0x168] sm:$0xff]  ;;  %v94_v15 = vld [vmem:[#allocation4 + $0x178] sm:$0xff] }
  0x20   :  { %189 = vmatpush.msra.mxu0 %v120_v50  ;;  %209 = vmatpush.msra.mxu1 %v121_v51  ;;  %v105_v16 = vld [vmem:[#allocation4 + $0x1d0] sm:$0xff]  ;;  %v87_v17 = vld [vmem:[#allocation4 + $0x140] sm:$0xff]  ;;  %v88_v18 = vld [vmem:[#allocation4 + $0x148] sm:$0xff] }
  0x21   :  { %249 = vmatpush.msra.mxu3 %v123_v52  ;;  %227 = vmatpush.msra.mxu2 %v130_v53  ;;  %v90_v19 = vld [vmem:[#allocation4 + $0x158] sm:$0xff]  ;;  %v101_v20 = vld [vmem:[#allocation4 + $0x1b0] sm:$0xff]  ;;  %v83_v21 = vld [vmem:[#allocation4 + $0x120] sm:$0xff] }
  0x22   :  { %190 = vmatpush.msra.mxu0 %v116_v54  ;;  %210 = vmatpush.msra.mxu1 %v117_v55  ;;  %v84_v22 = vld [vmem:[#allocation4 + $0x128] sm:$0xff]  ;;  %v86_v23 = vld [vmem:[#allocation4 + $0x138] sm:$0xff]  ;;  %v97_v24 = vld [vmem:[#allocation4 + $0x190] sm:$0xff] }
  0x23   :  { %250 = vmatpush.msra.mxu3 %v119_v56  ;;  %228 = vmatpush.msra.mxu2 %v126_v57  ;;  %v79_v25 = vld [vmem:[#allocation4 + $0x100] sm:$0xff]  ;;  %v80_v26 = vld [vmem:[#allocation4 + $0x108] sm:$0xff]  ;;  %v82_v27 = vld [vmem:[#allocation4 + $0x118] sm:$0xff] }
  0x24   :  { %191 = vmatpush.msra.mxu0 %v112_v58  ;;  %211 = vmatpush.msra.mxu1 %v113_v59  ;;  %v93_v28 = vld [vmem:[#allocation4 + $0x170] sm:$0xff]  ;;  %v75_v29 = vld [vmem:[#allocation4 + $0xe0] sm:$0xff]  ;;  %v76_v30 = vld [vmem:[#allocation4 + $0xe8] sm:$0xff] }
  0x25   :  { %251 = vmatpush.msra.mxu3 %v115_v60  ;;  %229 = vmatpush.msra.mxu2 %v122_v0  ;;  %v78_v31 = vld [vmem:[#allocation4 + $0xf8] sm:$0xff]  ;;  %v89_v32 = vld [vmem:[#allocation4 + $0x150] sm:$0xff]  ;;  %v71_v33 = vld [vmem:[#allocation4 + $0xc0] sm:$0xff] }
  0x26   :  { %256 = vmatpush.msrb.mxu0 %v107_v61  ;;  %276 = vmatpush.msrb.mxu1 %v108_v62  ;;  %v72_v34 = vld [vmem:[#allocation4 + $0xc8] sm:$0xff]  ;;  %v74_v35 = vld [vmem:[#allocation4 + $0xd8] sm:$0xff]  ;;  %v85_v36 = vld [vmem:[#allocation4 + $0x130] sm:$0xff] }
  0x27   :  { %316 = vmatpush.msrb.mxu3 %v110_v63  ;;  %230 = vmatpush.msra.mxu2 %v118_v4  ;;  %v67_v37 = vld [vmem:[#allocation4 + $0xa0] sm:$0xff]  ;;  %v68_v38 = vld [vmem:[#allocation4 + $0xa8] sm:$0xff]  ;;  %v70_v39 = vld [vmem:[#allocation4 + $0xb8] sm:$0xff] }
  0x28   :  { %257 = vmatpush.msrb.mxu0 %v103_v1  ;;  %277 = vmatpush.msrb.mxu1 %v104_v2  ;;  %v81_v40 = vld [vmem:[#allocation4 + $0x110] sm:$0xff]  ;;  %v63_v41 = vld [vmem:[#allocation4 + $0x80] sm:$0xff]  ;;  %v64_v42 = vld [vmem:[#allocation4 + $0x88] sm:$0xff] }
  0x29   :  { %317 = vmatpush.msrb.mxu3 %v106_v3  ;;  %231 = vmatpush.msra.mxu2 %v114_v8  ;;  %v66_v43 = vld [vmem:[#allocation4 + $0x98] sm:$0xff]  ;;  %v42_v44 = vld [vmem:[%s540_s1] sm:$0xff]  ;;  %v77_v45 = vld [vmem:[#allocation4 + $0xf0] sm:$0xff] }
  0x2a   :  { %258 = vmatpush.msrb.mxu0 %v99_v5  ;;  %278 = vmatpush.msrb.mxu1 %v100_v6  ;;  %v59_v46 = vld [vmem:[#allocation4 + $0x60] sm:$0xff]  ;;  %v60_v47 = vld [vmem:[#allocation4 + $0x68] sm:$0xff]  ;;  %v62_v48 = vld [vmem:[#allocation4 + $0x78] sm:$0xff] }
  0x2b   :  { %318 = vmatpush.msrb.mxu3 %v102_v7  ;;  %296 = vmatpush.msrb.mxu2 %v109_v12  ;;  %v73_v49 = vld [vmem:[#allocation4 + $0xd0] sm:$0xff]  ;;  %v55_v50 = vld [vmem:[#allocation4 + $0x40] sm:$0xff]  ;;  %v56_v51 = vld [vmem:[#allocation4 + $0x48] sm:$0xff] }
  0x2c   :  { %259 = vmatpush.msrb.mxu0 %v95_v9  ;;  %279 = vmatpush.msrb.mxu1 %v96_v10  ;;  %v58_v52 = vld [vmem:[#allocation4 + $0x58] sm:$0xff]  ;;  %v69_v53 = vld [vmem:[#allocation4 + $0xb0] sm:$0xff]  ;;  %v51_v54 = vld [vmem:[#allocation4 + $0x20] sm:$0xff] }
  0x2d   :  { %319 = vmatpush.msrb.mxu3 %v98_v11  ;;  %297 = vmatpush.msrb.mxu2 %v105_v16  ;;  %v52_v55 = vld [vmem:[#allocation4 + $0x28] sm:$0xff]  ;;  %v54_v56 = vld [vmem:[#allocation4 + $0x38] sm:$0xff]  ;;  %v65_v57 = vld [vmem:[#allocation4 + $0x90] sm:$0xff] }
  0x2e   :  { %260 = vmatpush.msrb.mxu0 %v91_v13  ;;  %280 = vmatpush.msrb.mxu1 %v92_v14  ;;  %v47_v58 = vld [vmem:[#allocation4] sm:$0xff]  ;;  %v48_v59 = vld [vmem:[#allocation4 + $0x8] sm:$0xff]  ;;  %v50_v60 = vld [vmem:[#allocation4 + $0x18] sm:$0xff] }
  0x2f   :  { %320 = vmatpush.msrb.mxu3 %v94_v15  ;;  %298 = vmatpush.msrb.mxu2 %v101_v20  ;;  %v46_v61 = vld [vmem:[%s539_s0] sm:$0xff]  ;;  %v61_v62 = vld [vmem:[#allocation4 + $0x70] sm:$0xff] }
  0x30   :  { %261 = vmatpush.msrb.mxu0 %v87_v17  ;;  %281 = vmatpush.msrb.mxu1 %v88_v18  ;;  %v57_v63 = vld [vmem:[#allocation4 + $0x50] sm:$0xff]  ;;  %v336_v4 = vld [vmem:[%s543_s4] sm:$0xf] }
  0x31   :  { %321 = vmatpush.msrb.mxu3 %v90_v19  ;;  %299 = vmatpush.msrb.mxu2 %v97_v24  ;;  %v53_v0 = vld [vmem:[#allocation4 + $0x30] sm:$0xff]  ;;  %v338_v6 = vperm.slane %v336_v4, 0  ;;  %v339_v7 = vperm.slane %v336_v4, 1  ;;  %v341_v17 = vperm.slane %v336_v4, 3 }
  0x32   :  { %262 = vmatpush.msrb.mxu0 %v83_v21  ;;  %282 = vmatpush.msrb.mxu1 %v84_v22  ;;  %v49_v1 = vld [vmem:[#allocation4 + $0x10] sm:$0xff] }
  0x33   :  { %322 = vmatpush.msrb.mxu3 %v86_v23  ;;  %300 = vmatpush.msrb.mxu2 %v93_v28  ;;  %v340_v28 = vperm.slane %v336_v4, 2 }
  0x34   :  { %263 = vmatpush.msrb.mxu0 %v79_v25  ;;  %283 = vmatpush.msrb.mxu1 %v80_v26 }
  0x35   :  { %323 = vmatpush.msrb.mxu3 %v82_v27  ;;  %301 = vmatpush.msrb.mxu2 %v89_v32 }
  0x36   :  { %264 = vmatpush.msrb.mxu0 %v75_v29  ;;  %284 = vmatpush.msrb.mxu1 %v76_v30 }
  0x37   :  { %324 = vmatpush.msrb.mxu3 %v78_v31  ;;  %302 = vmatpush.msrb.mxu2 %v85_v36 }
  0x38   :  { %265 = vmatpush.msrb.mxu0 %v71_v33  ;;  %285 = vmatpush.msrb.mxu1 %v72_v34 }
  0x39   :  { %325 = vmatpush.msrb.mxu3 %v74_v35  ;;  %303 = vmatpush.msrb.mxu2 %v81_v40 }
  0x3a   :  { %266 = vmatpush.msrb.mxu0 %v67_v37  ;;  %286 = vmatpush.msrb.mxu1 %v68_v38 }
  0x3b   :  { %326 = vmatpush.msrb.mxu3 %v70_v39  ;;  %192 = vmatmul.f32.vlgmr.msra.gmra.mxu0 %v42_v44 }
  0x3c   :  { %267 = vmatpush.msrb.mxu0 %v63_v41  ;;  %287 = vmatpush.msrb.mxu1 %v64_v42 }
  0x3d   :  { %327 = vmatpush.msrb.mxu3 %v66_v43  ;;  %212 = vmatmul.f32.vlgmr.msra.gmra.mxu1 %v42_v44 }
  0x3e   :  { %252 = vmatmul.f32.vlgmr.msra.gmra.mxu3 %v42_v44  ;;  %304 = vmatpush.msrb.mxu2 %v77_v45 }
  0x3f   :  { %268 = vmatpush.msrb.mxu0 %v59_v46  ;;  %288 = vmatpush.msrb.mxu1 %v60_v47 }
  0x40   :  { %328 = vmatpush.msrb.mxu3 %v62_v48  ;;  %305 = vmatpush.msrb.mxu2 %v73_v49 }
  0x41   :  { %269 = vmatpush.msrb.mxu0 %v55_v50  ;;  %289 = vmatpush.msrb.mxu1 %v56_v51  ;;  %v44_v50 = vld [vmem:[%s541_s2] sm:$0xff] }
  0x42   :  { %329 = vmatpush.msrb.mxu3 %v58_v52  ;;  %306 = vmatpush.msrb.mxu2 %v69_v53 }
  0x43   :  { %270 = vmatpush.msrb.mxu0 %v51_v54  ;;  %290 = vmatpush.msrb.mxu1 %v52_v55 }
  0x44   :  { %330 = vmatpush.msrb.mxu3 %v54_v56  ;;  %307 = vmatpush.msrb.mxu2 %v65_v57 }
  0x45   :  { %232 = vmatmul.f32.vlgmr.msra.gmra.mxu2 %v42_v44  ;;  %271 = vmatpush.msrb.mxu0 %v47_v58 }
  0x46   :  { %291 = vmatpush.msrb.mxu1 %v48_v59  ;;  %331 = vmatpush.msrb.mxu3 %v50_v60 }
  0x47   :  { %272 = vmatmul.f32.vlgmr.msrb.gmra.mxu0 %v46_v61  ;;  %292 = vmatmul.f32.vlgmr.msrb.gmra.mxu1 %v46_v61 }
  0x48   :  { %308 = vmatpush.msrb.mxu2 %v61_v62  ;;  %332 = vmatmul.f32.vlgmr.msrb.gmra.mxu3 %v46_v61 }
  0x4a   :  { %309 = vmatpush.msrb.mxu2 %v57_v63 }
  0x4c   :  { %310 = vmatpush.msrb.mxu2 %v53_v0 }
  0x4e   :  { %311 = vmatpush.msrb.mxu2 %v49_v1 }
  0x4f   :  { %312 = vmatmul.f32.vlgmr.msrb.gmra.mxu2 %v46_v61 }
  0xb8   :  { %v193_v2 = vpop.f32.mrf.mxu0 }
  0xba   :  { %v213_v3 = vpop.f32.mrf.mxu1 }
  0xc1   :  { %v253_v5 = vpop.f32.mrf.mxu3 }
  0xc4   :  { %v273_v8 = vpop.f32.mrf.mxu0  ;;  %v293_v9 = vpop.f32.mrf.mxu1 }
  0xc5   :  { %v274_v10 = vadd.f32 %v273_v8, %v193_v2  ;;  %v294_v11 = vadd.f32 %v293_v9, %v213_v3 }
  0xc7   :  { %v346_v12 = vadd.f32 %v338_v6, %v274_v10  ;;  %v347_v13 = vadd.f32 %v339_v7, %v294_v11 }
  0xc8   :  { %v233_v16 = vpop.f32.mrf.mxu2 }
  0xc9   :  { %v432_v14 = vmul.f32 -1.442695, %v346_v12  ;;  %v433_v15 = vmul.f32 -1.442695, %v347_v13 }
  0xcb   :  { %438 = vpow2.f32 %v432_v14  ;;  %v333_v18 = vpop.f32.mrf.mxu3 }
  0xcc   :  { %440 = vpow2.f32 %v433_v15  ;;  %v334_v19 = vadd.f32 %v333_v18, %v253_v5 }
  0xce   :  { %v349_v20 = vadd.f32 %v341_v17, %v334_v19 }
  0xd0   :  { %v434_v21 = vmul.f32 -1.442695, %v349_v20 }
  0xd1   :  { %v439_v22 = vpop.eup %438 }
  0xd2   :  { %v441_v23 = vpop.eup %440  ;;  %v353_v24 = vadd.f32 1.0, %v439_v22  ;;  %442 = vpow2.f32 %v434_v21  ;;  %v313_v26 = vpop.f32.mrf.mxu2 }
  0xd3   :  { %v372_v25 = vadd.f32 1.0, %v441_v23  ;;  %v314_v27 = vadd.f32 %v313_v26, %v233_v16 }
  0xd4   :  { %444 = vrcp.f32 %v353_v24  ;;  %v365_v38 = vand.u32 2147483648, %v353_v24  ;;  %v363_v41 = vand.u32 2147483647, %v353_v24  ;;  %vm359_vm2 = vweird.f32 %v353_v24 }
  0xd5   :  { %446 = vrcp.f32 %v372_v25  ;;  %v348_v32 = vadd.f32 %v340_v28, %v314_v27  ;;  %v384_v39 = vand.u32 2147483648, %v372_v25  ;;  %v382_v43 = vand.u32 2147483647, %v372_v25 }
  0xd6   :  { %vm378_vm3 = vweird.f32 %v372_v25  ;;  %v366_v47 = vor.u32 1.1754944e-38, %v365_v38  ;;  %vm364_vm6 = vcmp.eq.f32.partialorder %v363_v41, 8.507059e+37 }
  0xd7   :  { %v385_v49 = vor.u32 1.1754944e-38, %v384_v39  ;;  %vm383_vm7 = vcmp.eq.f32.partialorder %v382_v43, 8.507059e+37 }
  0xd8   :  { %v443_v29 = vpop.eup %442 }
  0xd9   :  { %v392_v30 = vadd.f32 1.0, %v443_v29 }
  0xda   :  { %v445_v31 = vpop.eup %444 }
  0xdb   :  { %v447_v33 = vpop.eup %446  ;;  %v355_v34 = vmul.f32 %v445_v31, %v353_v24  ;;  %448 = vrcp.f32 %v392_v30  ;;  %vm360_vm0 = vweird.f32 %v445_v31  ;;  %v404_v62 = vand.u32 2147483648, %v392_v30 }
  0xdc   :  { %v374_v35 = vmul.f32 %v447_v33, %v372_v25  ;;  %450 = vtanh.f32 %v348_v32  ;;  %vm379_vm1 = vweird.f32 %v447_v33  ;;  %vm361_vm4 = vmor %vm359_vm2, %vm360_vm0  ;;  %vm398_vm9 = vweird.f32 %v392_v30 }
  0xdd   :  { %v356_v36 = vsub.f32 1.0, %v355_v34  ;;  %vm380_vm5 = vmor %vm378_vm3, %vm379_vm1  ;;  %v402_v63 = vand.u32 2147483647, %v392_v30  ;;  %v405_v1 = vor.u32 1.1754944e-38, %v404_v62 }
  0xde   :  { %v375_v37 = vsub.f32 1.0, %v374_v35 }
  0xdf   :  { %v357_v40 = vmul.f32 %v445_v31, %v356_v36  ;;  %vm403_vm11 = vcmp.eq.f32.partialorder %v402_v63, 8.507059e+37 }
  0xe0   :  { %v376_v42 = vmul.f32 %v447_v33, %v375_v37 }
  0xe1   :  { %v449_v44 = vpop.eup %448  ;;  %v358_v45 = vadd.f32 %v445_v31, %v357_v40 }
  0xe2   :  { %v394_v46 = vmul.f32 %v449_v44, %v392_v30  ;;  %v377_v48 = vadd.f32 %v447_v33, %v376_v42  ;;  %v451_v52 = vpop.eup %450  ;;  %vm399_vm8 = vweird.f32 %v449_v44 }
  0xe3   :  { %v362_v51 = vsel %vm361_vm4, %v445_v31, %v358_v45  ;;  %vm400_vm10 = vmor %vm398_vm9, %vm399_vm8 }
  0xe4   :  { %v395_v53 = vsub.f32 1.0, %v394_v46  ;;  %v367_v54 = vsel %vm364_vm6, %v366_v47, %v362_v51  ;;  %v381_v55 = vsel %vm380_vm5, %v447_v33, %v377_v48 }
  0xe5   :  { %v386_v56 = vsel %vm383_vm7, %v385_v49, %v381_v55  ;;  %v410_v57 = vmul.f32 %v451_v52, %v367_v54 }
  0xe6   :  { %v396_v58 = vmul.f32 %v449_v44, %v395_v53  ;;  %v409_v59 = vmul.f32 %v386_v56, %v44_v50 }
  0xe8   :  { %v411_v60 = vadd.f32 %v410_v57, %v409_v59  ;;  %v397_v61 = vadd.f32 %v449_v44, %v396_v58 }
  0xea   :  { %452 = vtanh.f32 %v411_v60  ;;  %422 = vst [vmem:[%s545_s6] sm:$0xff] %v411_v60  ;;  %v401_v0 = vsel %vm400_vm10, %v449_v44, %v397_v61 }
  0xeb   :  { %v406_v3 = vsel %vm403_vm11, %v405_v1, %v401_v0 }
  0xf0   :  { %v453_v2 = vpop.eup %452 }
  0xf1   :  { %v413_v4 = vmul.f32 %v453_v2, %v406_v3 }
  0xf3   :  { %420 = vst [vmem:[%s544_s5] sm:$0xff] %v413_v4 }
  0xf4   :  { %431 = vsyncpa [#allocation5], 1 }

</bundles_post_ra>
